<compile_context>
chip_gen: v7x
topology: tpu7x:2x2x1
jax: 0.10.0
libtpu: 0.0.40
codegen_flags: <defaults>
</compile_context>

<pallas_src>
import functools

import jax
import jax.numpy as jnp
from jax.experimental import pallas as pl
from jax.experimental.pallas import tpu as pltpu

# ---------------- small synthetic DistilBERT-ish config ----------------
VOCAB = 100
MAX_POS = 16
EMBED_DIM = 32          # DistilBertConfig.dim (scaled down)
N_HEADS = 4
HEAD_DIM = EMBED_DIM // N_HEADS
FFN_DIM = 64            # DistilBertConfig.hidden_dim (scaled down)
N_LAYERS = 2
PROJ_DIM = 16
BATCH = 2
SEQ = 8
LN_EPS_BERT = 1e-12     # DistilBERT internal LayerNorm eps
LN_EPS_HEAD = 1e-5      # nn.LayerNorm default eps for the projection head
MASK_NEG = -1e9         # additive mask value (exp underflows to exactly 0)

VMEM_SPEC = pl.BlockSpec(memory_space=pltpu.MemorySpace.VMEM)


# ---------------- shared in-kernel helpers (f32 math) ----------------
def _layernorm(x, gamma, beta, eps):
    mu = jnp.mean(x, axis=-1, keepdims=True)
    var = jnp.mean(jnp.square(x - mu), axis=-1, keepdims=True)
    return (x - mu) * jax.lax.rsqrt(var + eps) * gamma + beta


def _softmax_last(x):
    m = jnp.max(x, axis=-1, keepdims=True)
    p = jnp.exp(x - m)
    return p * pl.reciprocal(jnp.sum(p, axis=-1, keepdims=True), approx=True)


# ---------------- fused forward kernel ----------------
def text_encoder_kernel(emb_ref, bias_ref, eg_ref, eb_ref,
                        wq_ref, bq_ref, wk_ref, bk_ref, wv_ref, bv_ref,
                        wo_ref, bo_ref, g1_ref, be1_ref,
                        w1_ref, fb1_ref, w2_ref, fb2_ref, g2_ref, be2_ref,
                        wp_ref, bp_ref, hg_ref, hb_ref,
                        o_ref, *, n_layers, n_heads, batch, seq,
                        eps_bert, eps_head):
    BS, H = emb_ref.shape                     # BS = batch * seq (flattened token axis)
    dh = H // n_heads
    scale = 1.0 / (dh ** 0.5)                 # DistilBERT scales q by 1/sqrt(dim_per_head)

    # embedding LayerNorm (dropout is identity in eval mode)
    x = _layernorm(emb_ref[...], eg_ref[...], eb_ref[...], eps_bert)     # (BS, H) f32

    # hoisted: additive attention bias (0 / MASK_NEG), pre-broadcast over heads ONCE
    attn_bias = jnp.broadcast_to(bias_ref[...][None, :, :], (n_heads, BS, BS))

    def to_heads(t):                          # (BS, H) -> (n_heads, BS, dh)
        # only 2-D / last-two-dim transposes + tile-aligned reshapes (Mosaic-friendly)
        return jnp.swapaxes(t.T.reshape(n_heads, dh, BS), 1, 2)

    for l in range(n_layers):                 # static loop; all weights VMEM-resident
        xb = x.astype(jnp.bfloat16)

        # QKV projections as full-width matmuls on the flat token axis (bf16 MXU, f32 acc)
        q = jnp.dot(xb, wq_ref[l], preferred_element_type=jnp.float32) + bq_ref[l]
        k = jnp.dot(xb, wk_ref[l], preferred_element_type=jnp.float32) + bk_ref[l]
        v = jnp.dot(xb, wv_ref[l], preferred_element_type=jnp.float32) + bv_ref[l]

        qh = to_heads(q * scale)              # (nH, BS, dh)
        kh = to_heads(k)
        vh = to_heads(v)

        # all-head scores / context as batched matmuls (heads on the batch dim)
        scores = jnp.einsum('hqd,hkd->hqk', qh.astype(jnp.bfloat16),
                            kh.astype(jnp.bfloat16),
                            preferred_element_type=jnp.float32)          # (nH, BS, BS)
        p = _softmax_last(scores + attn_bias)
        ctx = jnp.einsum('hqk,hkd->hqd', p.astype(jnp.bfloat16),
                         vh.astype(jnp.bfloat16),
                         preferred_element_type=jnp.float32)             # (nH, BS, dh)

        # back to (BS, H) with head-major columns, then ONE output projection
        ctx2 = jnp.swapaxes(ctx, 1, 2).reshape(H, BS).T                  # (BS, H)
        attn = jnp.dot(ctx2.astype(jnp.bfloat16), wo_ref[l],
                       preferred_element_type=jnp.float32) + bo_ref[l]

        # post-LN residual: sa_layer_norm(sa_output + x)
        x1 = _layernorm(x + attn, g1_ref[l], be1_ref[l], eps_bert)

        # FFN
        hdn = jnp.dot(x1.astype(jnp.bfloat16), w1_ref[l],
                      preferred_element_type=jnp.float32) + fb1_ref[l]
        # TODO(synk): HF DistilBERT uses exact erf-based GELU; tanh approximation used here.
        act = jax.nn.gelu(hdn, approximate=True)
        ffn = jnp.dot(act.astype(jnp.bfloat16), w2_ref[l],
                      preferred_element_type=jnp.float32) + fb2_ref[l]

        # output_layer_norm(ffn_output + sa_output)
        x = _layernorm(x1 + ffn, g2_ref[l], be2_ref[l], eps_bert)

    # CLS token per sequence, projection head + LayerNorm
    cls = x.reshape(batch, seq, H)[:, 0, :]                              # (B, H)
    y = jnp.dot(cls.astype(jnp.bfloat16), wp_ref[...],
                preferred_element_type=jnp.float32) + bp_ref[...]
    o_ref[...] = _layernorm(y, hg_ref[...], hb_ref[...], eps_head)


# ---------------- wrapper (plain-JAX glue: gather + mask bias) ----------------
def text_encoder_forward(params, input_ids, attention_mask):
    B, S = input_ids.shape
    H = params['word_emb'].shape[1]

    # embedding gather (plain-JAX glue; see production TODO at top of file)
    pos = jnp.arange(S)
    emb = params['word_emb'][input_ids] + params['pos_emb'][pos][None, :, :]
    emb = emb.reshape(B * S, H).astype(jnp.float32)

    # additive attention bias on the flattened token axis:
    # 0 where query & key belong to the same sequence and the key is not padding, else MASK_NEG
    tok_batch = jnp.repeat(jnp.arange(B), S)                 # (B*S,)
    same_seq = tok_batch[:, None] == tok_batch[None, :]
    key_valid = (attention_mask.reshape(-1) > 0)[None, :]
    bias2d = jnp.where(same_seq & key_valid, 0.0, MASK_NEG).astype(jnp.float32)

    kernel = functools.partial(
        text_encoder_kernel, n_layers=N_LAYERS, n_heads=N_HEADS,
        batch=B, seq=S, eps_bert=LN_EPS_BERT, eps_head=LN_EPS_HEAD)

    return pl.pallas_call(
        kernel,
        out_shape=jax.ShapeDtypeStruct((B, PROJ_DIM), jnp.float32),
        in_specs=[VMEM_SPEC] * 24,
        out_specs=VMEM_SPEC,
    )(emb, bias2d,
      params['emb_ln_g'], params['emb_ln_b'],
      params['wq'], params['bq'], params['wk'], params['bk'],
      params['wv'], params['bv'], params['wo'], params['bo'],
      params['ln1_g'], params['ln1_b'],
      params['w1'], params['b1'], params['w2'], params['b2'],
      params['ln2_g'], params['ln2_b'],
      params['proj_w'], params['proj_b'], params['ln_g'], params['ln_b'])


# ---------------- deterministic parameter init ----------------
def init_params(key):
    def nrm(k, shape, dtype=jnp.float32):
        return (0.02 * jax.random.normal(k, shape)).astype(dtype)

    keys = iter(jax.random.split(key, 16))
    L, H, F, P = N_LAYERS, EMBED_DIM, FFN_DIM, PROJ_DIM
    bf = jnp.bfloat16           # matmul weights stored bf16 (MXU operands)
    params = {
        'word_emb': nrm(next(keys), (VOCAB, H)),
        'pos_emb': nrm(next(keys), (MAX_POS, H)),
        'emb_ln_g': jnp.ones((1, H), jnp.float32),
        'emb_ln_b': jnp.zeros((1, H), jnp.float32),
        # per-layer params stacked along a leading layer dim
        'wq': nrm(next(keys), (L, H, H), bf), 'bq': jnp.zeros((L, 1, H), jnp.float32),
        'wk': nrm(next(keys), (L, H, H), bf), 'bk': jnp.zeros((L, 1, H), jnp.float32),
        'wv': nrm(next(keys), (L, H, H), bf), 'bv': jnp.zeros((L, 1, H), jnp.float32),
        'wo': nrm(next(keys), (L, H, H), bf), 'bo': jnp.zeros((L, 1, H), jnp.float32),
        'ln1_g': jnp.ones((L, 1, H), jnp.float32), 'ln1_b': jnp.zeros((L, 1, H), jnp.float32),
        'w1': nrm(next(keys), (L, H, F), bf), 'b1': jnp.zeros((L, 1, F), jnp.float32),
        'w2': nrm(next(keys), (L, F, H), bf), 'b2': jnp.zeros((L, 1, H), jnp.float32),
        'ln2_g': jnp.ones((L, 1, H), jnp.float32), 'ln2_b': jnp.zeros((L, 1, H), jnp.float32),
        # projection head
        'proj_w': nrm(next(keys), (H, P), bf), 'proj_b': jnp.zeros((1, P), jnp.float32),
        'ln_g': jnp.ones((1, P), jnp.float32), 'ln_b': jnp.zeros((1, P), jnp.float32),
    }
    return params


if __name__ == "__main__":
    key = jax.random.PRNGKey(0)
    pkey, ikey = jax.random.split(key)
    params = init_params(pkey)

    input_ids = jax.random.randint(ikey, (BATCH, SEQ), 0, VOCAB, dtype=jnp.int32)
    attention_mask = jnp.ones((BATCH, SEQ), jnp.int32)
    attention_mask = attention_mask.at[1, SEQ - 2:].set(0)   # pad tail of 2nd sequence

    fwd = jax.jit(text_encoder_forward)
    out = fwd(params, input_ids, attention_mask)
    out = jax.block_until_ready(out)
    assert out.shape == (BATCH, PROJ_DIM)
    assert bool(jnp.all(jnp.isfinite(out)))
    print("KERNEL_OK")
</pallas_src>

<mosaic_0001>
module attributes {stable_mosaic.version = 11 : i64} {
  func.func @text_encoder_kernel(%arg0: memref<16x32xf32, #tpu.memory_space<vmem>>, %arg1: memref<16x16xf32, #tpu.memory_space<vmem>>, %arg2: memref<1x32xf32, #tpu.memory_space<vmem>>, %arg3: memref<1x32xf32, #tpu.memory_space<vmem>>, %arg4: memref<2x32x32xbf16, #tpu.memory_space<vmem>>, %arg5: memref<2x1x32xf32, #tpu.memory_space<vmem>>, %arg6: memref<2x32x32xbf16, #tpu.memory_space<vmem>>, %arg7: memref<2x1x32xf32, #tpu.memory_space<vmem>>, %arg8: memref<2x32x32xbf16, #tpu.memory_space<vmem>>, %arg9: memref<2x1x32xf32, #tpu.memory_space<vmem>>, %arg10: memref<2x32x32xbf16, #tpu.memory_space<vmem>>, %arg11: memref<2x1x32xf32, #tpu.memory_space<vmem>>, %arg12: memref<2x1x32xf32, #tpu.memory_space<vmem>>, %arg13: memref<2x1x32xf32, #tpu.memory_space<vmem>>, %arg14: memref<2x32x64xbf16, #tpu.memory_space<vmem>>, %arg15: memref<2x1x64xf32, #tpu.memory_space<vmem>>, %arg16: memref<2x64x32xbf16, #tpu.memory_space<vmem>>, %arg17: memref<2x1x32xf32, #tpu.memory_space<vmem>>, %arg18: memref<2x1x32xf32, #tpu.memory_space<vmem>>, %arg19: memref<2x1x32xf32, #tpu.memory_space<vmem>>, %arg20: memref<32x16xbf16, #tpu.memory_space<vmem>>, %arg21: memref<1x16xf32, #tpu.memory_space<vmem>>, %arg22: memref<1x16xf32, #tpu.memory_space<vmem>>, %arg23: memref<1x16xf32, #tpu.memory_space<vmem>>, %arg24: memref<2x16xf32, #tpu.memory_space<vmem>>) attributes {dimension_semantics = [], scalar_prefetch = 0 : i64, scratch_operands = 0 : i64, tpu.core_type = #tpu.core_type<tc>} {
    %c0 = arith.constant 0 : index
    %c0_0 = arith.constant 0 : index
    %0 = vector.load %arg0[%c0, %c0_0] : memref<16x32xf32, #tpu.memory_space<vmem>>, vector<16x32xf32>
    %c0_1 = arith.constant 0 : index
    %c0_2 = arith.constant 0 : index
    %1 = vector.load %arg2[%c0_1, %c0_2] : memref<1x32xf32, #tpu.memory_space<vmem>>, vector<1x32xf32>
    %c0_3 = arith.constant 0 : index
    %c0_4 = arith.constant 0 : index
    %2 = vector.load %arg3[%c0_3, %c0_4] : memref<1x32xf32, #tpu.memory_space<vmem>>, vector<1x32xf32>
    %cst = arith.constant dense<0.000000e+00> : vector<16xf32>
    %3 = vector.multi_reduction <add>, %0, %cst [1] : vector<16x32xf32> to vector<16xf32>
    %4 = vector.shape_cast %3 : vector<16xf32> to vector<16x1xf32>
    %cst_5 = arith.constant 3.200000e+01 : f32
    %5 = vector.broadcast %cst_5 : f32 to vector<16x1xf32>
    %6 = arith.divf %4, %5 : vector<16x1xf32>
    %7 = vector.broadcast %6 : vector<16x1xf32> to vector<16x32xf32>
    %8 = arith.subf %0, %7 : vector<16x32xf32>
    %9 = arith.mulf %8, %8 : vector<16x32xf32>
    %cst_6 = arith.constant dense<0.000000e+00> : vector<16xf32>
    %10 = vector.multi_reduction <add>, %9, %cst_6 [1] : vector<16x32xf32> to vector<16xf32>
    %11 = vector.shape_cast %10 : vector<16xf32> to vector<16x1xf32>
    %cst_7 = arith.constant 3.200000e+01 : f32
    %12 = vector.broadcast %cst_7 : f32 to vector<16x1xf32>
    %13 = arith.divf %11, %12 : vector<16x1xf32>
    %14 = vector.broadcast %6 : vector<16x1xf32> to vector<16x32xf32>
    %15 = arith.subf %0, %14 : vector<16x32xf32>
    %cst_8 = arith.constant 9.99999996E-13 : f32
    %16 = vector.broadcast %cst_8 : f32 to vector<16x1xf32>
    %17 = arith.addf %13, %16 : vector<16x1xf32>
    %18 = math.rsqrt %17 : vector<16x1xf32>
    %19 = vector.broadcast %18 : vector<16x1xf32> to vector<16x32xf32>
    %20 = arith.mulf %15, %19 : vector<16x32xf32>
    %21 = vector.broadcast %1 : vector<1x32xf32> to vector<16x32xf32>
    %22 = arith.mulf %20, %21 : vector<16x32xf32>
    %23 = vector.broadcast %2 : vector<1x32xf32> to vector<16x32xf32>
    %24 = arith.addf %22, %23 : vector<16x32xf32>
    %c0_9 = arith.constant 0 : index
    %c0_10 = arith.constant 0 : index
    %25 = vector.load %arg1[%c0_9, %c0_10] : memref<16x16xf32, #tpu.memory_space<vmem>>, vector<16x16xf32>
    %26 = vector.shape_cast %25 : vector<16x16xf32> to vector<1x16x16xf32>
    %27 = vector.shape_cast %26 : vector<1x16x16xf32> to vector<1x16x16xf32>
    %28 = vector.broadcast %27 : vector<1x16x16xf32> to vector<4x16x16xf32>
    %29 = arith.truncf %24 : vector<16x32xf32> to vector<16x32xbf16>
    %c0_11 = arith.constant 0 : index
    %c0_12 = arith.constant 0 : index
    %c0_13 = arith.constant 0 : index
    %30 = vector.load %arg4[%c0_11, %c0_12, %c0_13] : memref<2x32x32xbf16, #tpu.memory_space<vmem>>, vector<1x32x32xbf16>
    %31 = vector.shape_cast %30 : vector<1x32x32xbf16> to vector<32x32xbf16>
    %cst_14 = arith.constant dense<0.000000e+00> : vector<16x32xf32>
    %32 = tpu.matmul %29, %31, %cst_14 {dimension_numbers = #tpu.dot_dimension_numbers<[1], [0], [0], [1], [0, 0, 1, 1], [], []>} : vector<16x32xbf16>, vector<32x32xbf16>, vector<16x32xf32> -> vector<16x32xf32>
    %c0_15 = arith.constant 0 : index
    %c0_16 = arith.constant 0 : index
    %c0_17 = arith.constant 0 : index
    %33 = vector.load %arg5[%c0_15, %c0_16, %c0_17] : memref<2x1x32xf32, #tpu.memory_space<vmem>>, vector<1x1x32xf32>
    %34 = vector.shape_cast %33 : vector<1x1x32xf32> to vector<1x32xf32>
    %35 = vector.broadcast %34 : vector<1x32xf32> to vector<16x32xf32>
    %36 = arith.addf %32, %35 : vector<16x32xf32>
    %c0_18 = arith.constant 0 : index
    %c0_19 = arith.constant 0 : index
    %c0_20 = arith.constant 0 : index
    %37 = vector.load %arg6[%c0_18, %c0_19, %c0_20] : memref<2x32x32xbf16, #tpu.memory_space<vmem>>, vector<1x32x32xbf16>
    %38 = vector.shape_cast %37 : vector<1x32x32xbf16> to vector<32x32xbf16>
    %cst_21 = arith.constant dense<0.000000e+00> : vector<16x32xf32>
    %39 = tpu.matmul %29, %38, %cst_21 {dimension_numbers = #tpu.dot_dimension_numbers<[1], [0], [0], [1], [0, 0, 1, 1], [], []>} : vector<16x32xbf16>, vector<32x32xbf16>, vector<16x32xf32> -> vector<16x32xf32>
    %c0_22 = arith.constant 0 : index
    %c0_23 = arith.constant 0 : index
    %c0_24 = arith.constant 0 : index
    %40 = vector.load %arg7[%c0_22, %c0_23, %c0_24] : memref<2x1x32xf32, #tpu.memory_space<vmem>>, vector<1x1x32xf32>
    %41 = vector.shape_cast %40 : vector<1x1x32xf32> to vector<1x32xf32>
    %42 = vector.broadcast %41 : vector<1x32xf32> to vector<16x32xf32>
    %43 = arith.addf %39, %42 : vector<16x32xf32>
    %c0_25 = arith.constant 0 : index
    %c0_26 = arith.constant 0 : index
    %c0_27 = arith.constant 0 : index
    %44 = vector.load %arg8[%c0_25, %c0_26, %c0_27] : memref<2x32x32xbf16, #tpu.memory_space<vmem>>, vector<1x32x32xbf16>
    %45 = vector.shape_cast %44 : vector<1x32x32xbf16> to vector<32x32xbf16>
    %cst_28 = arith.constant dense<0.000000e+00> : vector<16x32xf32>
    %46 = tpu.matmul %29, %45, %cst_28 {dimension_numbers = #tpu.dot_dimension_numbers<[1], [0], [0], [1], [0, 0, 1, 1], [], []>} : vector<16x32xbf16>, vector<32x32xbf16>, vector<16x32xf32> -> vector<16x32xf32>
    %c0_29 = arith.constant 0 : index
    %c0_30 = arith.constant 0 : index
    %c0_31 = arith.constant 0 : index
    %47 = vector.load %arg9[%c0_29, %c0_30, %c0_31] : memref<2x1x32xf32, #tpu.memory_space<vmem>>, vector<1x1x32xf32>
    %48 = vector.shape_cast %47 : vector<1x1x32xf32> to vector<1x32xf32>
    %49 = vector.broadcast %48 : vector<1x32xf32> to vector<16x32xf32>
    %50 = arith.addf %46, %49 : vector<16x32xf32>
    %cst_32 = arith.constant 0.353553385 : f32
    %51 = vector.broadcast %cst_32 : f32 to vector<16x32xf32>
    %52 = arith.mulf %36, %51 : vector<16x32xf32>
    %53 = tpu.transpose %52, [1, 0] : vector<16x32xf32> -> vector<32x16xf32>
    %54 = vector.shape_cast %53 : vector<32x16xf32> to vector<4x8x16xf32>
    %55 = tpu.transpose %54, [0, 2, 1] : vector<4x8x16xf32> -> vector<4x16x8xf32>
    %56 = tpu.transpose %43, [1, 0] : vector<16x32xf32> -> vector<32x16xf32>
    %57 = vector.shape_cast %56 : vector<32x16xf32> to vector<4x8x16xf32>
    %58 = tpu.transpose %57, [0, 2, 1] : vector<4x8x16xf32> -> vector<4x16x8xf32>
    %59 = tpu.transpose %50, [1, 0] : vector<16x32xf32> -> vector<32x16xf32>
    %60 = vector.shape_cast %59 : vector<32x16xf32> to vector<4x8x16xf32>
    %61 = tpu.transpose %60, [0, 2, 1] : vector<4x8x16xf32> -> vector<4x16x8xf32>
    %62 = arith.truncf %55 : vector<4x16x8xf32> to vector<4x16x8xbf16>
    %63 = arith.truncf %58 : vector<4x16x8xf32> to vector<4x16x8xbf16>
    "tpu.trace_start"() <{level = 10 : i32, message = "hqd,hkd->hqk"}> : () -> ()
    %cst_33 = arith.constant dense<0.000000e+00> : vector<4x16x16xf32>
    %64 = tpu.matmul %62, %63, %cst_33 {dimension_numbers = #tpu.dot_dimension_numbers<[2], [2], [1], [1], [0, 0, 0, 1, 1, 1], [0], [0]>} : vector<4x16x8xbf16>, vector<4x16x8xbf16>, vector<4x16x16xf32> -> vector<4x16x16xf32>
    "tpu.trace_stop"() : () -> ()
    %65 = arith.addf %64, %28 : vector<4x16x16xf32>
    %cst_34 = arith.constant dense<0xFF800000> : vector<4x16xf32>
    %66 = vector.multi_reduction <maximumf>, %65, %cst_34 [2] : vector<4x16x16xf32> to vector<4x16xf32>
    %67 = vector.shape_cast %66 : vector<4x16xf32> to vector<4x16x1xf32>
    %68 = vector.broadcast %67 : vector<4x16x1xf32> to vector<4x16x16xf32>
    %69 = arith.subf %65, %68 : vector<4x16x16xf32>
    %70 = math.exp %69 : vector<4x16x16xf32>
    %cst_35 = arith.constant dense<0.000000e+00> : vector<4x16xf32>
    %71 = vector.multi_reduction <add>, %70, %cst_35 [2] : vector<4x16x16xf32> to vector<4x16xf32>
    %72 = vector.shape_cast %71 : vector<4x16xf32> to vector<4x16x1xf32>
    %73 = tpu.reciprocal %72 {approx = true} : vector<4x16x1xf32> -> vector<4x16x1xf32>
    %74 = vector.broadcast %73 : vector<4x16x1xf32> to vector<4x16x16xf32>
    %75 = arith.mulf %70, %74 : vector<4x16x16xf32>
    %76 = arith.truncf %75 : vector<4x16x16xf32> to vector<4x16x16xbf16>
    %77 = arith.truncf %61 : vector<4x16x8xf32> to vector<4x16x8xbf16>
    "tpu.trace_start"() <{level = 10 : i32, message = "hqk,hkd->hqd"}> : () -> ()
    %cst_36 = arith.constant dense<0.000000e+00> : vector<4x16x8xf32>
    %78 = tpu.matmul %76, %77, %cst_36 {dimension_numbers = #tpu.dot_dimension_numbers<[2], [1], [1], [2], [0, 0, 0, 1, 1, 2], [0], [0]>} : vector<4x16x16xbf16>, vector<4x16x8xbf16>, vector<4x16x8xf32> -> vector<4x16x8xf32>
    "tpu.trace_stop"() : () -> ()
    %79 = tpu.transpose %78, [0, 2, 1] : vector<4x16x8xf32> -> vector<4x8x16xf32>
    %80 = vector.shape_cast %79 : vector<4x8x16xf32> to vector<32x16xf32>
    %81 = tpu.transpose %80, [1, 0] : vector<32x16xf32> -> vector<16x32xf32>
    %82 = arith.truncf %81 : vector<16x32xf32> to vector<16x32xbf16>
    %c0_37 = arith.constant 0 : index
    %c0_38 = arith.constant 0 : index
    %c0_39 = arith.constant 0 : index
    %83 = vector.load %arg10[%c0_37, %c0_38, %c0_39] : memref<2x32x32xbf16, #tpu.memory_space<vmem>>, vector<1x32x32xbf16>
    %84 = vector.shape_cast %83 : vector<1x32x32xbf16> to vector<32x32xbf16>
    %cst_40 = arith.constant dense<0.000000e+00> : vector<16x32xf32>
    %85 = tpu.matmul %82, %84, %cst_40 {dimension_numbers = #tpu.dot_dimension_numbers<[1], [0], [0], [1], [0, 0, 1, 1], [], []>} : vector<16x32xbf16>, vector<32x32xbf16>, vector<16x32xf32> -> vector<16x32xf32>
    %c0_41 = arith.constant 0 : index
    %c0_42 = arith.constant 0 : index
    %c0_43 = arith.constant 0 : index
    %86 = vector.load %arg11[%c0_41, %c0_42, %c0_43] : memref<2x1x32xf32, #tpu.memory_space<vmem>>, vector<1x1x32xf32>
    %87 = vector.shape_cast %86 : vector<1x1x32xf32> to vector<1x32xf32>
    %88 = vector.broadcast %87 : vector<1x32xf32> to vector<16x32xf32>
    %89 = arith.addf %85, %88 : vector<16x32xf32>
    %90 = arith.addf %24, %89 : vector<16x32xf32>
    %c0_44 = arith.constant 0 : index
    %c0_45 = arith.constant 0 : index
    %c0_46 = arith.constant 0 : index
    %91 = vector.load %arg12[%c0_44, %c0_45, %c0_46] : memref<2x1x32xf32, #tpu.memory_space<vmem>>, vector<1x1x32xf32>
    %92 = vector.shape_cast %91 : vector<1x1x32xf32> to vector<1x32xf32>
    %c0_47 = arith.constant 0 : index
    %c0_48 = arith.constant 0 : index
    %c0_49 = arith.constant 0 : index
    %93 = vector.load %arg13[%c0_47, %c0_48, %c0_49] : memref<2x1x32xf32, #tpu.memory_space<vmem>>, vector<1x1x32xf32>
    %94 = vector.shape_cast %93 : vector<1x1x32xf32> to vector<1x32xf32>
    %cst_50 = arith.constant dense<0.000000e+00> : vector<16xf32>
    %95 = vector.multi_reduction <add>, %90, %cst_50 [1] : vector<16x32xf32> to vector<16xf32>
    %96 = vector.shape_cast %95 : vector<16xf32> to vector<16x1xf32>
    %cst_51 = arith.constant 3.200000e+01 : f32
    %97 = vector.broadcast %cst_51 : f32 to vector<16x1xf32>
    %98 = arith.divf %96, %97 : vector<16x1xf32>
    %99 = vector.broadcast %98 : vector<16x1xf32> to vector<16x32xf32>
    %100 = arith.subf %90, %99 : vector<16x32xf32>
    %101 = arith.mulf %100, %100 : vector<16x32xf32>
    %cst_52 = arith.constant dense<0.000000e+00> : vector<16xf32>
    %102 = vector.multi_reduction <add>, %101, %cst_52 [1] : vector<16x32xf32> to vector<16xf32>
    %103 = vector.shape_cast %102 : vector<16xf32> to vector<16x1xf32>
    %cst_53 = arith.constant 3.200000e+01 : f32
    %104 = vector.broadcast %cst_53 : f32 to vector<16x1xf32>
    %105 = arith.divf %103, %104 : vector<16x1xf32>
    %106 = vector.broadcast %98 : vector<16x1xf32> to vector<16x32xf32>
    %107 = arith.subf %90, %106 : vector<16x32xf32>
    %cst_54 = arith.constant 9.99999996E-13 : f32
    %108 = vector.broadcast %cst_54 : f32 to vector<16x1xf32>
    %109 = arith.addf %105, %108 : vector<16x1xf32>
    %110 = math.rsqrt %109 : vector<16x1xf32>
    %111 = vector.broadcast %110 : vector<16x1xf32> to vector<16x32xf32>
    %112 = arith.mulf %107, %111 : vector<16x32xf32>
    %113 = vector.broadcast %92 : vector<1x32xf32> to vector<16x32xf32>
    %114 = arith.mulf %112, %113 : vector<16x32xf32>
    %115 = vector.broadcast %94 : vector<1x32xf32> to vector<16x32xf32>
    %116 = arith.addf %114, %115 : vector<16x32xf32>
    %117 = arith.truncf %116 : vector<16x32xf32> to vector<16x32xbf16>
    %c0_55 = arith.constant 0 : index
    %c0_56 = arith.constant 0 : index
    %c0_57 = arith.constant 0 : index
    %118 = vector.load %arg14[%c0_55, %c0_56, %c0_57] : memref<2x32x64xbf16, #tpu.memory_space<vmem>>, vector<1x32x64xbf16>
    %119 = vector.shape_cast %118 : vector<1x32x64xbf16> to vector<32x64xbf16>
    %cst_58 = arith.constant dense<0.000000e+00> : vector<16x64xf32>
    %120 = tpu.matmul %117, %119, %cst_58 {dimension_numbers = #tpu.dot_dimension_numbers<[1], [0], [0], [1], [0, 0, 1, 1], [], []>} : vector<16x32xbf16>, vector<32x64xbf16>, vector<16x64xf32> -> vector<16x64xf32>
    %c0_59 = arith.constant 0 : index
    %c0_60 = arith.constant 0 : index
    %c0_61 = arith.constant 0 : index
    %121 = vector.load %arg15[%c0_59, %c0_60, %c0_61] : memref<2x1x64xf32, #tpu.memory_space<vmem>>, vector<1x1x64xf32>
    %122 = vector.shape_cast %121 : vector<1x1x64xf32> to vector<1x64xf32>
    %123 = vector.broadcast %122 : vector<1x64xf32> to vector<16x64xf32>
    %124 = arith.addf %120, %123 : vector<16x64xf32>
    %125 = arith.mulf %124, %124 : vector<16x64xf32>
    %126 = arith.mulf %124, %125 : vector<16x64xf32>
    %cst_62 = arith.constant 4.471500e-02 : f32
    %127 = vector.broadcast %cst_62 : f32 to vector<16x64xf32>
    %128 = arith.mulf %127, %126 : vector<16x64xf32>
    %129 = arith.addf %124, %128 : vector<16x64xf32>
    %cst_63 = arith.constant 0.797884583 : f32
    %130 = vector.broadcast %cst_63 : f32 to vector<16x64xf32>
    %131 = arith.mulf %130, %129 : vector<16x64xf32>
    %132 = math.tanh %131 : vector<16x64xf32>
    %cst_64 = arith.constant 1.000000e+00 : f32
    %133 = vector.broadcast %cst_64 : f32 to vector<16x64xf32>
    %134 = arith.addf %133, %132 : vector<16x64xf32>
    %cst_65 = arith.constant 5.000000e-01 : f32
    %135 = vector.broadcast %cst_65 : f32 to vector<16x64xf32>
    %136 = arith.mulf %135, %134 : vector<16x64xf32>
    %137 = arith.mulf %124, %136 : vector<16x64xf32>
    %138 = arith.truncf %137 : vector<16x64xf32> to vector<16x64xbf16>
    %c0_66 = arith.constant 0 : index
    %c0_67 = arith.constant 0 : index
    %c0_68 = arith.constant 0 : index
    %139 = vector.load %arg16[%c0_66, %c0_67, %c0_68] : memref<2x64x32xbf16, #tpu.memory_space<vmem>>, vector<1x64x32xbf16>
    %140 = vector.shape_cast %139 : vector<1x64x32xbf16> to vector<64x32xbf16>
    %cst_69 = arith.constant dense<0.000000e+00> : vector<16x32xf32>
    %141 = tpu.matmul %138, %140, %cst_69 {dimension_numbers = #tpu.dot_dimension_numbers<[1], [0], [0], [1], [0, 0, 1, 1], [], []>} : vector<16x64xbf16>, vector<64x32xbf16>, vector<16x32xf32> -> vector<16x32xf32>
    %c0_70 = arith.constant 0 : index
    %c0_71 = arith.constant 0 : index
    %c0_72 = arith.constant 0 : index
    %142 = vector.load %arg17[%c0_70, %c0_71, %c0_72] : memref<2x1x32xf32, #tpu.memory_space<vmem>>, vector<1x1x32xf32>
    %143 = vector.shape_cast %142 : vector<1x1x32xf32> to vector<1x32xf32>
    %144 = vector.broadcast %143 : vector<1x32xf32> to vector<16x32xf32>
    %145 = arith.addf %141, %144 : vector<16x32xf32>
    %146 = arith.addf %116, %145 : vector<16x32xf32>
    %c0_73 = arith.constant 0 : index
    %c0_74 = arith.constant 0 : index
    %c0_75 = arith.constant 0 : index
    %147 = vector.load %arg18[%c0_73, %c0_74, %c0_75] : memref<2x1x32xf32, #tpu.memory_space<vmem>>, vector<1x1x32xf32>
    %148 = vector.shape_cast %147 : vector<1x1x32xf32> to vector<1x32xf32>
    %c0_76 = arith.constant 0 : index
    %c0_77 = arith.constant 0 : index
    %c0_78 = arith.constant 0 : index
    %149 = vector.load %arg19[%c0_76, %c0_77, %c0_78] : memref<2x1x32xf32, #tpu.memory_space<vmem>>, vector<1x1x32xf32>
    %150 = vector.shape_cast %149 : vector<1x1x32xf32> to vector<1x32xf32>
    %cst_79 = arith.constant dense<0.000000e+00> : vector<16xf32>
    %151 = vector.multi_reduction <add>, %146, %cst_79 [1] : vector<16x32xf32> to vector<16xf32>
    %152 = vector.shape_cast %151 : vector<16xf32> to vector<16x1xf32>
    %cst_80 = arith.constant 3.200000e+01 : f32
    %153 = vector.broadcast %cst_80 : f32 to vector<16x1xf32>
    %154 = arith.divf %152, %153 : vector<16x1xf32>
    %155 = vector.broadcast %154 : vector<16x1xf32> to vector<16x32xf32>
    %156 = arith.subf %146, %155 : vector<16x32xf32>
    %157 = arith.mulf %156, %156 : vector<16x32xf32>
    %cst_81 = arith.constant dense<0.000000e+00> : vector<16xf32>
    %158 = vector.multi_reduction <add>, %157, %cst_81 [1] : vector<16x32xf32> to vector<16xf32>
    %159 = vector.shape_cast %158 : vector<16xf32> to vector<16x1xf32>
    %cst_82 = arith.constant 3.200000e+01 : f32
    %160 = vector.broadcast %cst_82 : f32 to vector<16x1xf32>
    %161 = arith.divf %159, %160 : vector<16x1xf32>
    %162 = vector.broadcast %154 : vector<16x1xf32> to vector<16x32xf32>
    %163 = arith.subf %146, %162 : vector<16x32xf32>
    %cst_83 = arith.constant 9.99999996E-13 : f32
    %164 = vector.broadcast %cst_83 : f32 to vector<16x1xf32>
    %165 = arith.addf %161, %164 : vector<16x1xf32>
    %166 = math.rsqrt %165 : vector<16x1xf32>
    %167 = vector.broadcast %166 : vector<16x1xf32> to vector<16x32xf32>
    %168 = arith.mulf %163, %167 : vector<16x32xf32>
    %169 = vector.broadcast %148 : vector<1x32xf32> to vector<16x32xf32>
    %170 = arith.mulf %168, %169 : vector<16x32xf32>
    %171 = vector.broadcast %150 : vector<1x32xf32> to vector<16x32xf32>
    %172 = arith.addf %170, %171 : vector<16x32xf32>
    %173 = arith.truncf %172 : vector<16x32xf32> to vector<16x32xbf16>
    %c1 = arith.constant 1 : index
    %c0_84 = arith.constant 0 : index
    %c0_85 = arith.constant 0 : index
    %174 = vector.load %arg4[%c1, %c0_84, %c0_85] : memref<2x32x32xbf16, #tpu.memory_space<vmem>>, vector<1x32x32xbf16>
    %175 = vector.shape_cast %174 : vector<1x32x32xbf16> to vector<32x32xbf16>
    %cst_86 = arith.constant dense<0.000000e+00> : vector<16x32xf32>
    %176 = tpu.matmul %173, %175, %cst_86 {dimension_numbers = #tpu.dot_dimension_numbers<[1], [0], [0], [1], [0, 0, 1, 1], [], []>} : vector<16x32xbf16>, vector<32x32xbf16>, vector<16x32xf32> -> vector<16x32xf32>
    %c1_87 = arith.constant 1 : index
    %c0_88 = arith.constant 0 : index
    %c0_89 = arith.constant 0 : index
    %177 = vector.load %arg5[%c1_87, %c0_88, %c0_89] : memref<2x1x32xf32, #tpu.memory_space<vmem>>, vector<1x1x32xf32>
    %178 = vector.shape_cast %177 : vector<1x1x32xf32> to vector<1x32xf32>
    %179 = vector.broadcast %178 : vector<1x32xf32> to vector<16x32xf32>
    %180 = arith.addf %176, %179 : vector<16x32xf32>
    %c1_90 = arith.constant 1 : index
    %c0_91 = arith.constant 0 : index
    %c0_92 = arith.constant 0 : index
    %181 = vector.load %arg6[%c1_90, %c0_91, %c0_92] : memref<2x32x32xbf16, #tpu.memory_space<vmem>>, vector<1x32x32xbf16>
    %182 = vector.shape_cast %181 : vector<1x32x32xbf16> to vector<32x32xbf16>
    %cst_93 = arith.constant dense<0.000000e+00> : vector<16x32xf32>
    %183 = tpu.matmul %173, %182, %cst_93 {dimension_numbers = #tpu.dot_dimension_numbers<[1], [0], [0], [1], [0, 0, 1, 1], [], []>} : vector<16x32xbf16>, vector<32x32xbf16>, vector<16x32xf32> -> vector<16x32xf32>
    %c1_94 = arith.constant 1 : index
    %c0_95 = arith.constant 0 : index
    %c0_96 = arith.constant 0 : index
    %184 = vector.load %arg7[%c1_94, %c0_95, %c0_96] : memref<2x1x32xf32, #tpu.memory_space<vmem>>, vector<1x1x32xf32>
    %185 = vector.shape_cast %184 : vector<1x1x32xf32> to vector<1x32xf32>
    %186 = vector.broadcast %185 : vector<1x32xf32> to vector<16x32xf32>
    %187 = arith.addf %183, %186 : vector<16x32xf32>
    %c1_97 = arith.constant 1 : index
    %c0_98 = arith.constant 0 : index
    %c0_99 = arith.constant 0 : index
    %188 = vector.load %arg8[%c1_97, %c0_98, %c0_99] : memref<2x32x32xbf16, #tpu.memory_space<vmem>>, vector<1x32x32xbf16>
    %189 = vector.shape_cast %188 : vector<1x32x32xbf16> to vector<32x32xbf16>
    %cst_100 = arith.constant dense<0.000000e+00> : vector<16x32xf32>
    %190 = tpu.matmul %173, %189, %cst_100 {dimension_numbers = #tpu.dot_dimension_numbers<[1], [0], [0], [1], [0, 0, 1, 1], [], []>} : vector<16x32xbf16>, vector<32x32xbf16>, vector<16x32xf32> -> vector<16x32xf32>
    %c1_101 = arith.constant 1 : index
    %c0_102 = arith.constant 0 : index
    %c0_103 = arith.constant 0 : index
    %191 = vector.load %arg9[%c1_101, %c0_102, %c0_103] : memref<2x1x32xf32, #tpu.memory_space<vmem>>, vector<1x1x32xf32>
    %192 = vector.shape_cast %191 : vector<1x1x32xf32> to vector<1x32xf32>
    %193 = vector.broadcast %192 : vector<1x32xf32> to vector<16x32xf32>
    %194 = arith.addf %190, %193 : vector<16x32xf32>
    %cst_104 = arith.constant 0.353553385 : f32
    %195 = vector.broadcast %cst_104 : f32 to vector<16x32xf32>
    %196 = arith.mulf %180, %195 : vector<16x32xf32>
    %197 = tpu.transpose %196, [1, 0] : vector<16x32xf32> -> vector<32x16xf32>
    %198 = vector.shape_cast %197 : vector<32x16xf32> to vector<4x8x16xf32>
    %199 = tpu.transpose %198, [0, 2, 1] : vector<4x8x16xf32> -> vector<4x16x8xf32>
    %200 = tpu.transpose %187, [1, 0] : vector<16x32xf32> -> vector<32x16xf32>
    %201 = vector.shape_cast %200 : vector<32x16xf32> to vector<4x8x16xf32>
    %202 = tpu.transpose %201, [0, 2, 1] : vector<4x8x16xf32> -> vector<4x16x8xf32>
    %203 = tpu.transpose %194, [1, 0] : vector<16x32xf32> -> vector<32x16xf32>
    %204 = vector.shape_cast %203 : vector<32x16xf32> to vector<4x8x16xf32>
    %205 = tpu.transpose %204, [0, 2, 1] : vector<4x8x16xf32> -> vector<4x16x8xf32>
    %206 = arith.truncf %199 : vector<4x16x8xf32> to vector<4x16x8xbf16>
    %207 = arith.truncf %202 : vector<4x16x8xf32> to vector<4x16x8xbf16>
    "tpu.trace_start"() <{level = 10 : i32, message = "hqd,hkd->hqk"}> : () -> ()
    %cst_105 = arith.constant dense<0.000000e+00> : vector<4x16x16xf32>
    %208 = tpu.matmul %206, %207, %cst_105 {dimension_numbers = #tpu.dot_dimension_numbers<[2], [2], [1], [1], [0, 0, 0, 1, 1, 1], [0], [0]>} : vector<4x16x8xbf16>, vector<4x16x8xbf16>, vector<4x16x16xf32> -> vector<4x16x16xf32>
    "tpu.trace_stop"() : () -> ()
    %209 = arith.addf %208, %28 : vector<4x16x16xf32>
    %cst_106 = arith.constant dense<0xFF800000> : vector<4x16xf32>
    %210 = vector.multi_reduction <maximumf>, %209, %cst_106 [2] : vector<4x16x16xf32> to vector<4x16xf32>
    %211 = vector.shape_cast %210 : vector<4x16xf32> to vector<4x16x1xf32>
    %212 = vector.broadcast %211 : vector<4x16x1xf32> to vector<4x16x16xf32>
    %213 = arith.subf %209, %212 : vector<4x16x16xf32>
    %214 = math.exp %213 : vector<4x16x16xf32>
    %cst_107 = arith.constant dense<0.000000e+00> : vector<4x16xf32>
    %215 = vector.multi_reduction <add>, %214, %cst_107 [2] : vector<4x16x16xf32> to vector<4x16xf32>
    %216 = vector.shape_cast %215 : vector<4x16xf32> to vector<4x16x1xf32>
    %217 = tpu.reciprocal %216 {approx = true} : vector<4x16x1xf32> -> vector<4x16x1xf32>
    %218 = vector.broadcast %217 : vector<4x16x1xf32> to vector<4x16x16xf32>
    %219 = arith.mulf %214, %218 : vector<4x16x16xf32>
    %220 = arith.truncf %219 : vector<4x16x16xf32> to vector<4x16x16xbf16>
    %221 = arith.truncf %205 : vector<4x16x8xf32> to vector<4x16x8xbf16>
    "tpu.trace_start"() <{level = 10 : i32, message = "hqk,hkd->hqd"}> : () -> ()
    %cst_108 = arith.constant dense<0.000000e+00> : vector<4x16x8xf32>
    %222 = tpu.matmul %220, %221, %cst_108 {dimension_numbers = #tpu.dot_dimension_numbers<[2], [1], [1], [2], [0, 0, 0, 1, 1, 2], [0], [0]>} : vector<4x16x16xbf16>, vector<4x16x8xbf16>, vector<4x16x8xf32> -> vector<4x16x8xf32>
    "tpu.trace_stop"() : () -> ()
    %223 = tpu.transpose %222, [0, 2, 1] : vector<4x16x8xf32> -> vector<4x8x16xf32>
    %224 = vector.shape_cast %223 : vector<4x8x16xf32> to vector<32x16xf32>
    %225 = tpu.transpose %224, [1, 0] : vector<32x16xf32> -> vector<16x32xf32>
    %226 = arith.truncf %225 : vector<16x32xf32> to vector<16x32xbf16>
    %c1_109 = arith.constant 1 : index
    %c0_110 = arith.constant 0 : index
    %c0_111 = arith.constant 0 : index
    %227 = vector.load %arg10[%c1_109, %c0_110, %c0_111] : memref<2x32x32xbf16, #tpu.memory_space<vmem>>, vector<1x32x32xbf16>
    %228 = vector.shape_cast %227 : vector<1x32x32xbf16> to vector<32x32xbf16>
    %cst_112 = arith.constant dense<0.000000e+00> : vector<16x32xf32>
    %229 = tpu.matmul %226, %228, %cst_112 {dimension_numbers = #tpu.dot_dimension_numbers<[1], [0], [0], [1], [0, 0, 1, 1], [], []>} : vector<16x32xbf16>, vector<32x32xbf16>, vector<16x32xf32> -> vector<16x32xf32>
    %c1_113 = arith.constant 1 : index
    %c0_114 = arith.constant 0 : index
    %c0_115 = arith.constant 0 : index
    %230 = vector.load %arg11[%c1_113, %c0_114, %c0_115] : memref<2x1x32xf32, #tpu.memory_space<vmem>>, vector<1x1x32xf32>
    %231 = vector.shape_cast %230 : vector<1x1x32xf32> to vector<1x32xf32>
    %232 = vector.broadcast %231 : vector<1x32xf32> to vector<16x32xf32>
    %233 = arith.addf %229, %232 : vector<16x32xf32>
    %234 = arith.addf %172, %233 : vector<16x32xf32>
    %c1_116 = arith.constant 1 : index
    %c0_117 = arith.constant 0 : index
    %c0_118 = arith.constant 0 : index
    %235 = vector.load %arg12[%c1_116, %c0_117, %c0_118] : memref<2x1x32xf32, #tpu.memory_space<vmem>>, vector<1x1x32xf32>
    %236 = vector.shape_cast %235 : vector<1x1x32xf32> to vector<1x32xf32>
    %c1_119 = arith.constant 1 : index
    %c0_120 = arith.constant 0 : index
    %c0_121 = arith.constant 0 : index
    %237 = vector.load %arg13[%c1_119, %c0_120, %c0_121] : memref<2x1x32xf32, #tpu.memory_space<vmem>>, vector<1x1x32xf32>
    %238 = vector.shape_cast %237 : vector<1x1x32xf32> to vector<1x32xf32>
    %cst_122 = arith.constant dense<0.000000e+00> : vector<16xf32>
    %239 = vector.multi_reduction <add>, %234, %cst_122 [1] : vector<16x32xf32> to vector<16xf32>
    %240 = vector.shape_cast %239 : vector<16xf32> to vector<16x1xf32>
    %cst_123 = arith.constant 3.200000e+01 : f32
    %241 = vector.broadcast %cst_123 : f32 to vector<16x1xf32>
    %242 = arith.divf %240, %241 : vector<16x1xf32>
    %243 = vector.broadcast %242 : vector<16x1xf32> to vector<16x32xf32>
    %244 = arith.subf %234, %243 : vector<16x32xf32>
    %245 = arith.mulf %244, %244 : vector<16x32xf32>
    %cst_124 = arith.constant dense<0.000000e+00> : vector<16xf32>
    %246 = vector.multi_reduction <add>, %245, %cst_124 [1] : vector<16x32xf32> to vector<16xf32>
    %247 = vector.shape_cast %246 : vector<16xf32> to vector<16x1xf32>
    %cst_125 = arith.constant 3.200000e+01 : f32
    %248 = vector.broadcast %cst_125 : f32 to vector<16x1xf32>
    %249 = arith.divf %247, %248 : vector<16x1xf32>
    %250 = vector.broadcast %242 : vector<16x1xf32> to vector<16x32xf32>
    %251 = arith.subf %234, %250 : vector<16x32xf32>
    %cst_126 = arith.constant 9.99999996E-13 : f32
    %252 = vector.broadcast %cst_126 : f32 to vector<16x1xf32>
    %253 = arith.addf %249, %252 : vector<16x1xf32>
    %254 = math.rsqrt %253 : vector<16x1xf32>
    %255 = vector.broadcast %254 : vector<16x1xf32> to vector<16x32xf32>
    %256 = arith.mulf %251, %255 : vector<16x32xf32>
    %257 = vector.broadcast %236 : vector<1x32xf32> to vector<16x32xf32>
    %258 = arith.mulf %256, %257 : vector<16x32xf32>
    %259 = vector.broadcast %238 : vector<1x32xf32> to vector<16x32xf32>
    %260 = arith.addf %258, %259 : vector<16x32xf32>
    %261 = arith.truncf %260 : vector<16x32xf32> to vector<16x32xbf16>
    %c1_127 = arith.constant 1 : index
    %c0_128 = arith.constant 0 : index
    %c0_129 = arith.constant 0 : index
    %262 = vector.load %arg14[%c1_127, %c0_128, %c0_129] : memref<2x32x64xbf16, #tpu.memory_space<vmem>>, vector<1x32x64xbf16>
    %263 = vector.shape_cast %262 : vector<1x32x64xbf16> to vector<32x64xbf16>
    %cst_130 = arith.constant dense<0.000000e+00> : vector<16x64xf32>
    %264 = tpu.matmul %261, %263, %cst_130 {dimension_numbers = #tpu.dot_dimension_numbers<[1], [0], [0], [1], [0, 0, 1, 1], [], []>} : vector<16x32xbf16>, vector<32x64xbf16>, vector<16x64xf32> -> vector<16x64xf32>
    %c1_131 = arith.constant 1 : index
    %c0_132 = arith.constant 0 : index
    %c0_133 = arith.constant 0 : index
    %265 = vector.load %arg15[%c1_131, %c0_132, %c0_133] : memref<2x1x64xf32, #tpu.memory_space<vmem>>, vector<1x1x64xf32>
    %266 = vector.shape_cast %265 : vector<1x1x64xf32> to vector<1x64xf32>
    %267 = vector.broadcast %266 : vector<1x64xf32> to vector<16x64xf32>
    %268 = arith.addf %264, %267 : vector<16x64xf32>
    %269 = arith.mulf %268, %268 : vector<16x64xf32>
    %270 = arith.mulf %268, %269 : vector<16x64xf32>
    %cst_134 = arith.constant 4.471500e-02 : f32
    %271 = vector.broadcast %cst_134 : f32 to vector<16x64xf32>
    %272 = arith.mulf %271, %270 : vector<16x64xf32>
    %273 = arith.addf %268, %272 : vector<16x64xf32>
    %cst_135 = arith.constant 0.797884583 : f32
    %274 = vector.broadcast %cst_135 : f32 to vector<16x64xf32>
    %275 = arith.mulf %274, %273 : vector<16x64xf32>
    %276 = math.tanh %275 : vector<16x64xf32>
    %cst_136 = arith.constant 1.000000e+00 : f32
    %277 = vector.broadcast %cst_136 : f32 to vector<16x64xf32>
    %278 = arith.addf %277, %276 : vector<16x64xf32>
    %cst_137 = arith.constant 5.000000e-01 : f32
    %279 = vector.broadcast %cst_137 : f32 to vector<16x64xf32>
    %280 = arith.mulf %279, %278 : vector<16x64xf32>
    %281 = arith.mulf %268, %280 : vector<16x64xf32>
    %282 = arith.truncf %281 : vector<16x64xf32> to vector<16x64xbf16>
    %c1_138 = arith.constant 1 : index
    %c0_139 = arith.constant 0 : index
    %c0_140 = arith.constant 0 : index
    %283 = vector.load %arg16[%c1_138, %c0_139, %c0_140] : memref<2x64x32xbf16, #tpu.memory_space<vmem>>, vector<1x64x32xbf16>
    %284 = vector.shape_cast %283 : vector<1x64x32xbf16> to vector<64x32xbf16>
    %cst_141 = arith.constant dense<0.000000e+00> : vector<16x32xf32>
    %285 = tpu.matmul %282, %284, %cst_141 {dimension_numbers = #tpu.dot_dimension_numbers<[1], [0], [0], [1], [0, 0, 1, 1], [], []>} : vector<16x64xbf16>, vector<64x32xbf16>, vector<16x32xf32> -> vector<16x32xf32>
    %c1_142 = arith.constant 1 : index
    %c0_143 = arith.constant 0 : index
    %c0_144 = arith.constant 0 : index
    %286 = vector.load %arg17[%c1_142, %c0_143, %c0_144] : memref<2x1x32xf32, #tpu.memory_space<vmem>>, vector<1x1x32xf32>
    %287 = vector.shape_cast %286 : vector<1x1x32xf32> to vector<1x32xf32>
    %288 = vector.broadcast %287 : vector<1x32xf32> to vector<16x32xf32>
    %289 = arith.addf %285, %288 : vector<16x32xf32>
    %290 = arith.addf %260, %289 : vector<16x32xf32>
    %c1_145 = arith.constant 1 : index
    %c0_146 = arith.constant 0 : index
    %c0_147 = arith.constant 0 : index
    %291 = vector.load %arg18[%c1_145, %c0_146, %c0_147] : memref<2x1x32xf32, #tpu.memory_space<vmem>>, vector<1x1x32xf32>
    %292 = vector.shape_cast %291 : vector<1x1x32xf32> to vector<1x32xf32>
    %c1_148 = arith.constant 1 : index
    %c0_149 = arith.constant 0 : index
    %c0_150 = arith.constant 0 : index
    %293 = vector.load %arg19[%c1_148, %c0_149, %c0_150] : memref<2x1x32xf32, #tpu.memory_space<vmem>>, vector<1x1x32xf32>
    %294 = vector.shape_cast %293 : vector<1x1x32xf32> to vector<1x32xf32>
    %cst_151 = arith.constant dense<0.000000e+00> : vector<16xf32>
    %295 = vector.multi_reduction <add>, %290, %cst_151 [1] : vector<16x32xf32> to vector<16xf32>
    %296 = vector.shape_cast %295 : vector<16xf32> to vector<16x1xf32>
    %cst_152 = arith.constant 3.200000e+01 : f32
    %297 = vector.broadcast %cst_152 : f32 to vector<16x1xf32>
    %298 = arith.divf %296, %297 : vector<16x1xf32>
    %299 = vector.broadcast %298 : vector<16x1xf32> to vector<16x32xf32>
    %300 = arith.subf %290, %299 : vector<16x32xf32>
    %301 = arith.mulf %300, %300 : vector<16x32xf32>
    %cst_153 = arith.constant dense<0.000000e+00> : vector<16xf32>
    %302 = vector.multi_reduction <add>, %301, %cst_153 [1] : vector<16x32xf32> to vector<16xf32>
    %303 = vector.shape_cast %302 : vector<16xf32> to vector<16x1xf32>
    %cst_154 = arith.constant 3.200000e+01 : f32
    %304 = vector.broadcast %cst_154 : f32 to vector<16x1xf32>
    %305 = arith.divf %303, %304 : vector<16x1xf32>
    %306 = vector.broadcast %298 : vector<16x1xf32> to vector<16x32xf32>
    %307 = arith.subf %290, %306 : vector<16x32xf32>
    %cst_155 = arith.constant 9.99999996E-13 : f32
    %308 = vector.broadcast %cst_155 : f32 to vector<16x1xf32>
    %309 = arith.addf %305, %308 : vector<16x1xf32>
    %310 = math.rsqrt %309 : vector<16x1xf32>
    %311 = vector.broadcast %310 : vector<16x1xf32> to vector<16x32xf32>
    %312 = arith.mulf %307, %311 : vector<16x32xf32>
    %313 = vector.broadcast %292 : vector<1x32xf32> to vector<16x32xf32>
    %314 = arith.mulf %312, %313 : vector<16x32xf32>
    %315 = vector.broadcast %294 : vector<1x32xf32> to vector<16x32xf32>
    %316 = arith.addf %314, %315 : vector<16x32xf32>
    %317 = vector.shape_cast %316 : vector<16x32xf32> to vector<2x8x32xf32>
    %318 = vector.extract_strided_slice %317 {offsets = [0, 0, 0], sizes = [2, 1, 32], strides = [1, 1, 1]} : vector<2x8x32xf32> to vector<2x1x32xf32>
    %319 = vector.shape_cast %318 : vector<2x1x32xf32> to vector<2x32xf32>
    %320 = arith.truncf %319 : vector<2x32xf32> to vector<2x32xbf16>
    %c0_156 = arith.constant 0 : index
    %c0_157 = arith.constant 0 : index
    %321 = vector.load %arg20[%c0_156, %c0_157] : memref<32x16xbf16, #tpu.memory_space<vmem>>, vector<32x16xbf16>
    %cst_158 = arith.constant dense<0.000000e+00> : vector<2x16xf32>
    %322 = tpu.matmul %320, %321, %cst_158 {dimension_numbers = #tpu.dot_dimension_numbers<[1], [0], [0], [1], [0, 0, 1, 1], [], []>} : vector<2x32xbf16>, vector<32x16xbf16>, vector<2x16xf32> -> vector<2x16xf32>
    %c0_159 = arith.constant 0 : index
    %c0_160 = arith.constant 0 : index
    %323 = vector.load %arg21[%c0_159, %c0_160] : memref<1x16xf32, #tpu.memory_space<vmem>>, vector<1x16xf32>
    %324 = vector.broadcast %323 : vector<1x16xf32> to vector<2x16xf32>
    %325 = arith.addf %322, %324 : vector<2x16xf32>
    %c0_161 = arith.constant 0 : index
    %c0_162 = arith.constant 0 : index
    %326 = vector.load %arg22[%c0_161, %c0_162] : memref<1x16xf32, #tpu.memory_space<vmem>>, vector<1x16xf32>
    %c0_163 = arith.constant 0 : index
    %c0_164 = arith.constant 0 : index
    %327 = vector.load %arg23[%c0_163, %c0_164] : memref<1x16xf32, #tpu.memory_space<vmem>>, vector<1x16xf32>
    %cst_165 = arith.constant dense<0.000000e+00> : vector<2xf32>
    %328 = vector.multi_reduction <add>, %325, %cst_165 [1] : vector<2x16xf32> to vector<2xf32>
    %329 = vector.shape_cast %328 : vector<2xf32> to vector<2x1xf32>
    %cst_166 = arith.constant 1.600000e+01 : f32
    %330 = vector.broadcast %cst_166 : f32 to vector<2x1xf32>
    %331 = arith.divf %329, %330 : vector<2x1xf32>
    %332 = vector.broadcast %331 : vector<2x1xf32> to vector<2x16xf32>
    %333 = arith.subf %325, %332 : vector<2x16xf32>
    %334 = arith.mulf %333, %333 : vector<2x16xf32>
    %cst_167 = arith.constant dense<0.000000e+00> : vector<2xf32>
    %335 = vector.multi_reduction <add>, %334, %cst_167 [1] : vector<2x16xf32> to vector<2xf32>
    %336 = vector.shape_cast %335 : vector<2xf32> to vector<2x1xf32>
    %cst_168 = arith.constant 1.600000e+01 : f32
    %337 = vector.broadcast %cst_168 : f32 to vector<2x1xf32>
    %338 = arith.divf %336, %337 : vector<2x1xf32>
    %339 = vector.broadcast %331 : vector<2x1xf32> to vector<2x16xf32>
    %340 = arith.subf %325, %339 : vector<2x16xf32>
    %cst_169 = arith.constant 9.99999974E-6 : f32
    %341 = vector.broadcast %cst_169 : f32 to vector<2x1xf32>
    %342 = arith.addf %338, %341 : vector<2x1xf32>
    %343 = math.rsqrt %342 : vector<2x1xf32>
    %344 = vector.broadcast %343 : vector<2x1xf32> to vector<2x16xf32>
    %345 = arith.mulf %340, %344 : vector<2x16xf32>
    %346 = vector.broadcast %326 : vector<1x16xf32> to vector<2x16xf32>
    %347 = arith.mulf %345, %346 : vector<2x16xf32>
    %348 = vector.broadcast %327 : vector<1x16xf32> to vector<2x16xf32>
    %349 = arith.addf %347, %348 : vector<2x16xf32>
    %c0_170 = arith.constant 0 : index
    %c0_171 = arith.constant 0 : index
    %350 = vector.load %arg24[%c0_170, %c0_171] : memref<2x16xf32, #tpu.memory_space<vmem>>, vector<2x16xf32>
    tpu.vector_store %arg24[%c0_170, %c0_171], %349 {strides = array<i32>} : memref<2x16xf32, #tpu.memory_space<vmem>>, vector<2x16xf32>,
    return
  }
}

</mosaic_0001>

<bundles_post_ra>
// kernel: text_encoder_forward.1
= control target key start
LH: loop header
LB: loop body
LE: loop exit
PB: predicated region body
PF: predicated region fallthrough
CT: control target
= control target key end

     0   :  { %s4896_s0 = inlined_call_operand.vmem [shape: f32[16,32], index: 0, kind: input, shape index: {}]   ;;  %s4897_s1 = inlined_call_operand.vmem [shape: f32[16,16], index: 1, kind: input, shape index: {}]   ;;  %s4898_s2 = inlined_call_operand.vmem [shape: f32[1,32], index: 2, kind: input, shape index: {}]   ;;  %s4899_s3 = inlined_call_operand.vmem [shape: f32[1,32], index: 3, kind: input, shape index: {}]   ;;  %s4900_s4 = inlined_call_operand.vmem [shape: bf16[2,32,32], index: 4, kind: input, shape index: {}]   ;;  %s4901_s5 = inlined_call_operand.vmem [shape: f32[2,1,32], index: 5, kind: input, shape index: {}]   ;;  %s4902_s6 = inlined_call_operand.vmem [shape: bf16[2,32,32], index: 6, kind: input, shape index: {}]   ;;  %s4903_s7 = inlined_call_operand.vmem [shape: f32[2,1,32], index: 7, kind: input, shape index: {}]   ;;  %s4904_s8 = inlined_call_operand.vmem [shape: bf16[2,32,32], index: 8, kind: input, shape index: {}]   ;;  %s4905_s9 = inlined_call_operand.vmem [shape: f32[2,1,32], index: 9, kind: input, shape index: {}]   ;;  %s4906_s10 = inlined_call_operand.vmem [shape: bf16[2,32,32], index: 10, kind: input, shape index: {}]   ;;  %s4907_s11 = inlined_call_operand.vmem [shape: f32[2,1,32], index: 11, kind: input, shape index: {}]   ;;  %s4908_s12 = inlined_call_operand.vmem [shape: f32[2,1,32], index: 12, kind: input, shape index: {}]   ;;  %s4909_s13 = inlined_call_operand.vmem [shape: f32[2,1,32], index: 13, kind: input, shape index: {}]   ;;  %s4910_s14 = inlined_call_operand.vmem [shape: bf16[2,32,64], index: 14, kind: input, shape index: {}]   ;;  %s4911_s15 = inlined_call_operand.vmem [shape: f32[2,1,64], index: 15, kind: input, shape index: {}]   ;;  %s4912_s16 = inlined_call_operand.vmem [shape: bf16[2,64,32], index: 16, kind: input, shape index: {}]   ;;  %s4913_s17 = inlined_call_operand.vmem [shape: f32[2,1,32], index: 17, kind: input, shape index: {}]   ;;  %s4914_s18 = inlined_call_operand.vmem [shape: f32[2,1,32], index: 18, kind: input, shape index: {}]   ;;  %s4915_s19 = inlined_call_operand.vmem [shape: f32[2,1,32], index: 19, kind: input, shape index: {}]   ;;  %s4916_s20 = inlined_call_operand.vmem [shape: bf16[32,16], index: 20, kind: input, shape index: {}]   ;;  %s4917_s21 = inlined_call_operand.vmem [shape: f32[1,16], index: 21, kind: input, shape index: {}]   ;;  %s4918_s22 = inlined_call_operand.vmem [shape: f32[1,16], index: 22, kind: input, shape index: {}]   ;;  %s4919_s23 = inlined_call_operand.vmem [shape: f32[1,16], index: 23, kind: input, shape index: {}]   ;;  %s4920_s24 = inlined_call_operand.hbm [shape: f32[2,16], index: 24, kind: output, shape index: {}]  }
   0x1   :  { %4928 = sst [smem:[#allocation5_spill]] %s4896_s0 }
   0x2   :  { %4929 = sst [smem:[#allocation6_spill]] %s4897_s1 }
   0x3   :  { %4930 = sst [smem:[#allocation7_spill]] %s4898_s2 }
   0x4   :  { %4931 = sst [smem:[#allocation8_spill]] %s4899_s3 }
   0x5   :  { %4932 = sst [smem:[#allocation9_spill]] %s4900_s4 }
   0x6   :  { %4933 = sst [smem:[#allocation10_spill]] %s4901_s5 }
   0x7   :  { %4934 = sst [smem:[#allocation11_spill]] %s4902_s6 }
   0x8   :  { %4935 = sst [smem:[#allocation12_spill]] %s4903_s7 }
   0x9   :  { %4936 = sst [smem:[#allocation13_spill]] %s4904_s8 }
   0xa   :  { %s4937_s27 = sld [smem:[#allocation5_spill]]  ;;  %vm83_vm0 = vcmask 261120  }
  0x10   :  { %v79_v0 = vld [vmem:[%s4937_s27] sm:$0xff]  ;;  %v80_v1 = vld [vmem:[%s4937_s27 + $0x8] sm:$0xff] }
  0x11   :  { %v84_v2 = vsel %vm83_vm0, %v79_v0, 0.0  ;;  %v87_v3 = vsel %vm83_vm0, %v80_v1, 0.0 }
  0x12   :  { %85 = vadd.xlane.f32.xlu0 %v84_v2 }
  0x16   :  { %88 = vadd.xlane.f32.xlu0 %v87_v3 }
  0x17   :  { %29 = vsyncpa [#allocation3], 0  ;;  %s4938_s0 = sld [smem:[#allocation9_spill]]  ;;  %s4939_s3 = sld [smem:[#allocation11_spill]]  ;;  %v4280_v16 = vmov 0.0   ;;  %vm4281_vm1 = vmmov 0  }
  0x18   :  { %3739 = vmatprep.subr.bf16.mxu0 %v4280_v16  ;;  %3747 = vmatprep.subr.bf16.mxu1 %v4280_v16  ;;  %s4940_s27 = sld [smem:[#allocation7_spill]]  ;;  %s4941_s2 = sld [smem:[#allocation8_spill]]  ;;  %vm815_vm2 = vcmask 64512   ;;  %vm1004_vm3 = vcmask 130048   ;;  %vm1677_vm4 = vcmask 523264   ;;  %vm3438_vm5 = vcmask 1041409  }
  0x19   :  { %3743 = vmatprep.mubr.msk.bf16.mxu0 %vm4281_vm1, %v4280_v16  ;;  %3751 = vmatprep.mubr.msk.bf16.mxu1 %vm4281_vm1, %v4280_v16  ;;  %s4942_s30 = sld [smem:[#allocation13_spill]]  ;;  %s4943_s5 = sld [smem:[#allocation10_spill]]  ;;  %vm3498_vm6 = vcmask 123904  }
  0x1a   :  { %s4944_s28 = sld [smem:[#allocation12_spill]]  ;;  %s4945_s29 = sld [smem:[#allocation6_spill]] }
  0x1d   :  { %v4130_v14 = vld [vmem:[%s4938_s0] sm:$0xff]   ;;  %v4132_v17 = vld [vmem:[%s4938_s0 + $0x8] sm:$0xff]  }
  0x1e   :  { %v4131_v15 = vld [vmem:[%s4939_s3] sm:$0xff]   ;;  %3740 = vmatpush3.bf16.msra.mxu0 %v4130_v14  ;;  %v4133_v18 = vld [vmem:[%s4939_s3 + $0x8] sm:$0xff]  }
  0x1f   :  { %3748 = vmatpush3.bf16.msra.mxu1 %v4131_v15  ;;  %3741 = vmatprep.subr.bf16.mxu0 %v4280_v16  ;;  %v3542_v27 = vld [vmem:[%s4940_s27] ss:$0 sm:$0xff]  ;;  %v4135_v37 = vld [vmem:[%s4942_s30 + $0x8] sm:$0xff]  }
  0x20   :  { %3749 = vmatprep.subr.bf16.mxu1 %v4280_v16  ;;  %v3543_v31 = vld [vmem:[%s4941_s2] ss:$0 sm:$0xff] }
  0x21   :  { %v4134_v35 = vld [vmem:[%s4942_s30] sm:$0xff]  }
  0x22   :  { %3742 = vmatpush3.bf16.msra.mxu0 %v4132_v17  ;;  %v3544_v38 = vld [vmem:[%s4943_s5] ss:$0 sm:$0xff] }
  0x23   :  { %3750 = vmatpush3.bf16.msra.mxu1 %v4133_v18  ;;  %3755 = vmatprep.subr.bf16.mxu0 %v4280_v16  ;;  %v3548_v39 = vld [vmem:[%s4944_s28] ss:$0 sm:$0xff] }
  0x24   :  { %3763 = vmatprep.subr.bf16.mxu1 %v4280_v16 }
  0x9f   :  { %v86_v4 = vpop.xlane.xlu0 %85 }
  0xa0   :  { %v91_v5 = vmul.f32 0.03125, %v86_v4 }
  0xa2   :  { %v93_v6 = vsub.f32 %v79_v0, %v91_v5 }
  0xa3   :  { %v89_v7 = vpop.xlane.xlu0 %88 }
  0xa4   :  { %v92_v8 = vmul.f32 0.03125, %v89_v7  ;;  %v95_v9 = vmul.f32 %v93_v6, %v93_v6 }
  0xa6   :  { %v94_v10 = vsub.f32 %v80_v1, %v92_v8  ;;  %v97_v11 = vsel %vm83_vm0, %v95_v9, 0.0 }
  0xa7   :  { %98 = vadd.xlane.f32.xlu1 %v97_v11 }
  0xa8   :  { %v96_v12 = vmul.f32 %v94_v10, %v94_v10 }
  0xaa   :  { %v100_v13 = vsel %vm83_vm0, %v96_v12, 0.0 }
  0xab   :  { %101 = vadd.xlane.f32.xlu1 %v100_v13 }
 0x134   :  { %v99_v19 = vpop.xlane.xlu1 %98 }
 0x135   :  { %v103_v20 = vmul.f32 0.03125, %v99_v19 }
 0x137   :  { %v105_v21 = vadd.f32 1e-12, %v103_v20 }
 0x138   :  { %v102_v22 = vpop.xlane.xlu1 %101 }
 0x139   :  { %4160 = vrsqrt.f32 %v105_v21  ;;  %v104_v23 = vmul.f32 0.03125, %v102_v22 }
 0x13b   :  { %v106_v24 = vadd.f32 1e-12, %v104_v23 }
 0x13d   :  { %4162 = vrsqrt.f32 %v106_v24 }
 0x143   :  { %v4161_v25 = vpop.eup %4160 }
 0x144   :  { %v109_v26 = vmul.f32 %v4161_v25, %v93_v6 }
 0x146   :  { %v117_v30 = vmul.f32 %v3542_v27, %v109_v26 }
 0x147   :  { %v4163_v28 = vpop.eup %4162 }
 0x148   :  { %v110_v29 = vmul.f32 %v4163_v28, %v94_v10  ;;  %v4446_v33 = vadd.f32 %v3543_v31, %v117_v30 }
 0x14a   :  { %v118_v32 = vmul.f32 %v3542_v27, %v110_v29 }
 0x14c   :  { %v4448_v34 = vadd.f32 %v3543_v31, %v118_v32 }
 0x14e   :  { %v129_v36 = vpack.c.bf16 %v4448_v34, %v4446_v33 }
 0x150   :  { %3744 = vmatmul.mubr.msk.bf16.vlgmr.msra.gmra.mrb[0].mxu0 %vm83_vm0, %v129_v36  ;;  %3752 = vmatmul.mubr.msk.bf16.vlgmr.msra.gmra.mrb[0].mxu1 %vm83_vm0, %v129_v36 }
 0x151   :  { %3756 = vmatpush3.bf16.msra.mxu0 %v4134_v35  ;;  %3759 = vmatprep.mubr.msk.bf16.mxu0 %vm4281_vm1, %v4280_v16 }
 0x152   :  { %3757 = vmatprep.subr.bf16.mxu0 %v4280_v16  ;;  %3765 = vmatprep.mubr.msk.bf16.mxu1 %vm4281_vm1, %v4280_v16 }
 0x155   :  { %3758 = vmatpush3.bf16.msra.mxu0 %v4135_v37 }
 0x156   :  { %3769 = vmatprep.subr.bf16.mxu0 %v4280_v16 }
 0x158   :  { %3760 = vmatmul.mubr.msk.bf16.vlgmr.msra.gmra.mrb[4].mxu0 %vm83_vm0, %v129_v36 }
 0x159   :  { %3771 = vmatprep.mubr.msk.bf16.mxu0 %vm4281_vm1, %v4280_v16 }
 0x223   :  { %v190_v40 = vpop.f32.mrb[0].mxu0  ;;  %v254_v41 = vpop.f32.mrb[0].mxu1 }
 0x224   :  { %v191_v42 = vadd.f32 %v3544_v38, %v190_v40  ;;  %v255_v43 = vadd.f32 %v3548_v39, %v254_v41  ;;  %v3745_v44 = vpop.f32.mrb[1].mxu0  ;;  %v3753_v45 = vpop.f32.mrb[1].mxu1 }
 0x225   :  { %v193_v46 = vpop.f32.mrb[2].mxu0  ;;  %v257_v47 = vpop.f32.mrb[2].mxu1  ;;  %v4502_v45 = vld [vmem:[%s4945_s29] sm:$0xff] }
 0x226   :  { %v325_v48 = vmul.f32 0.35355338, %v191_v42  ;;  %v194_v49 = vadd.f32 %v3544_v38, %v193_v46  ;;  %487 = vxpose.xlu0.b32.start [1/2] (short) (narrow) %v255_v43, 32  ;;  %v3746_v50 = vpop.f32.mrb[3].mxu0  ;;  %v3754_v51 = vpop.f32.mrb[3].mxu1  ;;  %v258_v52 = vadd.f32 %v3548_v39, %v257_v47 }
 0x228   :  { %327 = vxpose.xlu1.b32.start [1/2] (short) (narrow) %v325_v48, 32  ;;  %v326_v53 = vmul.f32 0.35355338, %v194_v49  ;;  %v128_v48 = vld [vmem:[%s4945_s29 + $0x8] sm:$0xff] }
 0x22a   :  { %488 = vxpose.xlu0.b32.end [2/2] (short) (narrow) %v258_v52, 32 }
 0x22b   :  { %v4475_v54 = vpop.f32.mrb[4].mxu0 }
 0x22c   :  { %328 = vxpose.xlu1.b32.end [2/2] (short) (narrow) %v326_v53, 32  ;;  %v3761_v55 = vpop.f32.mrb[5].mxu0 }
 0x22d   :  { %v4477_v56 = vpop.f32.mrb[6].mxu0 }
 0x22e   :  { %v3762_v57 = vpop.f32.mrb[7].mxu0 }
 0x2a6   :  { %v503_v58 = vpop.trf.xlu0 }
 0x2a8   :  { %v343_v59 = vpop.trf.xlu1 }
 0x2aa   :  { %v504_v60 = vpop.trf.xlu0 }
 0x2ab   :  { %v3950_v61 = vpack.i.bf16 %v504_v60, %v503_v58 }
 0x2ac   :  { %v344_v62 = vpop.trf.xlu1 }
 0x2ad   :  { %3951 = vxpose.xlu0.b32.start.end [1/1] (short) (narrow) %v3950_v61, 16 }
 0x2ae   :  { %v505_v63 = vpop.trf.xlu0 }
 0x2af   :  { %v3962_v0 = vpack.i.bf16 %v505_v63, %v343_v59 }
 0x2b0   :  { %v345_v1 = vpop.trf.xlu1 }
 0x2b1   :  { %3963 = vxpose.xlu1.b32.start.end [1/1] (short) (narrow) %v3962_v0, 16 }
 0x2b2   :  { %v506_v2 = vpop.trf.xlu0 }
 0x2b3   :  { %v3974_v3 = vpack.i.bf16 %v506_v2, %v344_v62 }
 0x2b4   :  { %v346_v4 = vpop.trf.xlu1 }
 0x2b5   :  { %3975 = vxpose.xlu0.b32.start.end [1/1] (short) (narrow) %v3974_v3, 16  ;;  %v3986_v5 = vpack.i.bf16 %v346_v4, %v345_v1 }
 0x2ba   :  { %3987 = vxpose.xlu0.b32.start.end [1/1] (short) (narrow) %v3986_v5, 16 }
 0x32d   :  { %v3952_v6 = vpop.trf.xlu0 }
 0x32e   :  { %v3953_v9 = vunpack.i.l.bf16 %v3952_v6  ;;  %v3956_v12 = vunpack.i.h.bf16 %v3952_v6 }
 0x331   :  { %v3957_v7 = vpop.trf.xlu0  ;;  %v3964_v8 = vpop.trf.xlu1 }
 0x332   :  { %v3958_v10 = vunpack.i.l.bf16 %v3957_v7  ;;  %v3961_v11 = vunpack.i.h.bf16 %v3957_v7  ;;  %v3968_v18 = vunpack.i.h.bf16 %v3964_v8  ;;  %v3965_v24 = vunpack.i.l.bf16 %v3964_v8 }
 0x334   :  { %v811_v15 = vpack.c.bf16 %v3958_v10, %v3953_v9  ;;  %v812_v17 = vpack.c.bf16 %v3961_v11, %v3956_v12 }
 0x335   :  { %v3976_v13 = vpop.trf.xlu0  ;;  %v3969_v14 = vpop.trf.xlu1 }
 0x336   :  { %v3980_v19 = vunpack.i.h.bf16 %v3976_v13  ;;  %v3977_v20 = vunpack.i.l.bf16 %v3976_v13  ;;  %v3973_v21 = vunpack.i.h.bf16 %v3969_v14  ;;  %v820_v22 = vsel %vm815_vm2, %v811_v15, 0 }
 0x337   :  { %v867_v23 = vsel %vm815_vm2, %v812_v17, 0  ;;  %v3970_v25 = vunpack.i.l.bf16 %v3969_v14  ;;  %3764 = vmatpush3.bf16.xpose.msra.mxu1 %v820_v22 }
 0x338   :  { %3770 = vmatpush3.bf16.xpose.msra.mxu0 %v867_v23  ;;  %3775 = vmatprep.subr.bf16.mxu1 %v4280_v16  ;;  %v813_v30 = vpack.c.bf16 %v3973_v21, %v3968_v18 }
 0x339   :  { %v3981_v26 = vpop.trf.xlu0  ;;  %3781 = vmatprep.subr.bf16.mxu0 %v4280_v16  ;;  %v807_v35 = vpack.c.bf16 %v3970_v25, %v3965_v24 }
 0x33a   :  { %v3985_v27 = vunpack.i.h.bf16 %v3981_v26  ;;  %v3982_v28 = vunpack.i.l.bf16 %v3981_v26  ;;  %v914_v39 = vsel %vm815_vm2, %v813_v30, 0 }
 0x33c   :  { %v808_v29 = vpack.c.bf16 %v3982_v28, %v3977_v20  ;;  %v814_v31 = vpack.c.bf16 %v3985_v27, %v3980_v19 }
 0x33d   :  { %v3988_v32 = vpop.trf.xlu0 }
 0x33e   :  { %v961_v36 = vsel %vm815_vm2, %v814_v31, 0  ;;  %v3992_v37 = vunpack.i.h.bf16 %v3988_v32  ;;  %v3989_v38 = vunpack.i.l.bf16 %v3988_v32  ;;  %3766 = vmatmul.mubr.msk.bf16.vlgmr.msra.gmra.mrb[4].mxu1 %vm815_vm2, %v807_v35 }
 0x33f   :  { %3772 = vmatmul.mubr.msk.bf16.vlgmr.msra.gmra.mrb[8].mxu0 %vm815_vm2, %v808_v29  ;;  %3776 = vmatpush3.bf16.xpose.msra.mxu1 %v914_v39 }
 0x340   :  { %3782 = vmatpush3.bf16.xpose.msra.mxu0 %v961_v36  ;;  %3777 = vmatprep.mubr.msk.bf16.mxu1 %vm4281_vm1, %v4280_v16  ;;  %v3552_v36 = vld [vmem:[%s4905_s9] ss:$0 sm:$0xff] }
 0x341   :  { %v3993_v40 = vpop.trf.xlu0  ;;  %3783 = vmatprep.mubr.msk.bf16.mxu0 %vm4281_vm1, %v4280_v16  ;;  %3787 = vmatprep.subr.bf16.mxu1 %v4280_v16 }
 0x342   :  { %v3997_v41 = vunpack.i.h.bf16 %v3993_v40  ;;  %v3994_v42 = vunpack.i.l.bf16 %v3993_v40  ;;  %3793 = vmatprep.subr.bf16.mxu0 %v4280_v16 }
 0x344   :  { %v809_v43 = vpack.c.bf16 %v3994_v42, %v3989_v38  ;;  %v810_v44 = vpack.c.bf16 %v3997_v41, %v3992_v37  ;;  %v319_v37 = vadd.f32 %v3552_v36, %v4475_v54  ;;  %v322_v38 = vadd.f32 %v3552_v36, %v4477_v56 }
 0x346   :  { %3778 = vmatmul.mubr.msk.bf16.vlgmr.msra.gmra.mrb[8].mxu1 %vm815_vm2, %v809_v43 }
 0x347   :  { %3784 = vmatmul.mubr.msk.bf16.vlgmr.msra.gmra.mrb[12].mxu0 %vm815_vm2, %v810_v44  ;;  %3789 = vmatprep.mubr.msk.bf16.mxu1 %vm4281_vm1, %v4280_v16 }
 0x348   :  { %3795 = vmatprep.mubr.msk.bf16.mxu0 %vm4281_vm1, %v4280_v16 }
 0x411   :  { %v856_v46 = vpop.f32.mrb[4].mxu1 }
 0x412   :  { %v903_v47 = vpop.f32.mrb[8].mxu0  ;;  %v857_v49 = vadd.f32 %v856_v46, %v4502_v45  ;;  %v3767_v50 = vpop.f32.mrb[5].mxu1 }
 0x413   :  { %v3773_v51 = vpop.f32.mrb[9].mxu0  ;;  %v859_v52 = vpop.f32.mrb[6].mxu1  ;;  %v904_v55 = vadd.f32 %v903_v47, %v4502_v45 }
 0x414   :  { %v906_v53 = vpop.f32.mrb[10].mxu0  ;;  %v4509_v57 = vadd.f32 %v859_v52, %v128_v48  ;;  %v3768_v58 = vpop.f32.mrb[7].mxu1  ;;  %v1005_v60 = vsel %vm1004_vm3, %v857_v49, -inf }
 0x415   :  { %v3774_v59 = vpop.f32.mrb[11].mxu0  ;;  %1006 = vmax.xlane.f32.xlu1 %v1005_v60  ;;  %v4514_v62 = vadd.f32 %v906_v53, %v128_v48  ;;  %v1011_v63 = vsel %vm1004_vm3, %v904_v55, -inf }
 0x416   :  { %v1008_v61 = vsel %vm1004_vm3, %v4509_v57, -inf }
 0x417   :  { %1009 = vmax.xlane.f32.xlu0 %v1008_v61  ;;  %v1014_v10 = vsel %vm1004_vm3, %v4514_v62, -inf }
 0x419   :  { %v950_v0 = vpop.f32.mrb[8].mxu1  ;;  %1012 = vmax.xlane.f32.xlu1 %v1011_v63 }
 0x41a   :  { %v997_v1 = vpop.f32.mrb[12].mxu0  ;;  %v3779_v2 = vpop.f32.mrb[9].mxu1  ;;  %v951_v6 = vadd.f32 %v950_v0, %v4502_v45 }
 0x41b   :  { %v3785_v3 = vpop.f32.mrb[13].mxu0  ;;  %v953_v4 = vpop.f32.mrb[10].mxu1  ;;  %v998_v13 = vadd.f32 %v997_v1, %v4502_v45 }
 0x41c   :  { %v1000_v5 = vpop.f32.mrb[14].mxu0  ;;  %v954_v7 = vadd.f32 %v953_v4, %v128_v48  ;;  %v3780_v8 = vpop.f32.mrb[11].mxu1  ;;  %v1017_v14 = vsel %vm1004_vm3, %v951_v6, -inf }
 0x41d   :  { %v3786_v9 = vpop.f32.mrb[15].mxu0  ;;  %1015 = vmax.xlane.f32.xlu1 %v1014_v10  ;;  %v1001_v11 = vadd.f32 %v1000_v5, %v128_v48  ;;  %v1023_v17 = vsel %vm1004_vm3, %v998_v13, -inf }
 0x41e   :  { %v1020_v12 = vsel %vm1004_vm3, %v954_v7, -inf }
 0x41f   :  { %1021 = vmax.xlane.f32.xlu0 %v1020_v12  ;;  %v1026_v15 = vsel %vm1004_vm3, %v1001_v11, -inf }
 0x421   :  { %1018 = vmax.xlane.f32.xlu1 %v1017_v14 }
 0x423   :  { %1027 = vmax.xlane.f32.xlu0 %v1026_v15 }
 0x425   :  { %1024 = vmax.xlane.f32.xlu1 %v1023_v17 }
 0x4a2   :  { %v1007_v18 = vpop.xlane.xlu1 %1006 }
 0x4a3   :  { %v1029_v19 = vsub.f32 %v857_v49, %v1007_v18 }
 0x4a4   :  { %v1010_v47 = vpop.xlane.xlu0 %1009 }
 0x4a5   :  { %v1037_v20 = vmul.f32 1.442695, %v1029_v19  ;;  %v1030_v48 = vsub.f32 %v4509_v57, %v1010_v47 }
 0x4a6   :  { %v1013_v21 = vpop.xlane.xlu1 %1012 }
 0x4a7   :  { %4164 = vpow2.f32 %v1037_v20  ;;  %v1031_v22 = vsub.f32 %v904_v55, %v1013_v21  ;;  %v1039_v49 = vmul.f32 1.442695, %v1030_v48 }
 0x4a9   :  { %v1041_v23 = vmul.f32 1.442695, %v1031_v22 }
 0x4aa   :  { %v1016_v24 = vpop.xlane.xlu1 %1015 }
 0x4ab   :  { %4166 = vpow2.f32 %v1041_v23  ;;  %v1032_v50 = vsub.f32 %v4514_v62, %v1016_v24 }
 0x4ac   :  { %v1022_v54 = vpop.xlane.xlu0 %1021 }
 0x4ad   :  { %v1043_v51 = vmul.f32 1.442695, %v1032_v50  ;;  %v1034_v56 = vsub.f32 %v954_v7, %v1022_v54 }
 0x4ae   :  { %v1019_v25 = vpop.xlane.xlu1 %1018 }
 0x4af   :  { %v1033_v26 = vsub.f32 %v951_v6, %v1019_v25  ;;  %v1047_v52 = vmul.f32 1.442695, %v1034_v56 }
 0x4b0   :  { %v1028_v55 = vpop.xlane.xlu0 %1027 }
 0x4b1   :  { %v4525_v27 = vpop.eup %4164  ;;  %v1045_v28 = vmul.f32 1.442695, %v1033_v26  ;;  %v1036_v58 = vsub.f32 %v1001_v11, %v1028_v55 }
 0x4b2   :  { %v1053_v29 = vsel %vm1004_vm3, %v4525_v27, 0.0  ;;  %v1025_v39 = vpop.xlane.xlu1 %1024 }
 0x4b3   :  { %4168 = vpow2.f32 %v1045_v28  ;;  %1054 = vadd.xlane.f32.xlu1 %v1053_v29  ;;  %v1035_v53 = vsub.f32 %v998_v13, %v1025_v39  ;;  %v1051_v61 = vmul.f32 1.442695, %v1036_v58 }
 0x4b4   :  { %4170 = vpow2.f32 %v1039_v49 }
 0x4b5   :  { %v4529_v30 = vpop.eup %4166  ;;  %4172 = vpow2.f32 %v1043_v51  ;;  %v1049_v59 = vmul.f32 1.442695, %v1035_v53 }
 0x4b6   :  { %v1059_v31 = vsel %vm1004_vm3, %v4529_v30, 0.0  ;;  %4174 = vpow2.f32 %v1047_v52 }
 0x4b7   :  { %1060 = vadd.xlane.f32.xlu1 %v1059_v31  ;;  %4176 = vpow2.f32 %v1049_v59 }
 0x4b8   :  { %4178 = vpow2.f32 %v1051_v61 }
 0x4bd   :  { %v4533_v32 = vpop.eup %4168 }
 0x4be   :  { %v1065_v35 = vsel %vm1004_vm3, %v4533_v32, 0.0  ;;  %v4171_v60 = vpop.eup %4170 }
 0x4bf   :  { %1066 = vadd.xlane.f32.xlu1 %v1065_v35  ;;  %v1056_v63 = vsel %vm1004_vm3, %v4171_v60, 0.0  ;;  %v4173_v57 = vpop.eup %4172 }
 0x4c0   :  { %v1062_v62 = vsel %vm1004_vm3, %v4173_v57, 0.0  ;;  %v4548_v0 = vpop.eup %4174 }
 0x4c1   :  { %v1068_v1 = vsel %vm1004_vm3, %v4548_v0, 0.0  ;;  %v4552_v2 = vpop.eup %4176 }
 0x4c2   :  { %v1071_v3 = vsel %vm1004_vm3, %v4552_v2, 0.0  ;;  %v4179_v4 = vpop.eup %4178 }
 0x4c3   :  { %v1074_v5 = vsel %vm1004_vm3, %v4179_v4, 0.0 }
 0x4f2   :  { %647 = vxpose.xlu1.b32.start [1/2] (short) (narrow) %v319_v37, 32 }
 0x4f6   :  { %648 = vxpose.xlu1.b32.end [2/2] (short) (narrow) %v322_v38, 32 }
 0x540   :  { %v1055_v40 = vpop.xlane.xlu1 %1054 }
 0x541   :  { %4180 = vrcp.f32 %v1055_v40 }
 0x544   :  { %v1061_v41 = vpop.xlane.xlu1 %1060 }
 0x54b   :  { %v4181_v20 = vpop.eup %4180 }
 0x54c   :  { %v4542_v42 = vpop.xlane.xlu1 %1066  ;;  %v1085_v22 = vmul.f32 %v4181_v20, %v4525_v27 }
 0x572   :  { %v663_v43 = vpop.trf.xlu1 }
 0x576   :  { %v664_v44 = vpop.trf.xlu1 }
 0x577   :  { %v3998_v46 = vpack.i.bf16 %v664_v44, %v663_v43 }
 0x579   :  { %3999 = vxpose.xlu0.b32.start.end [1/1] (short) (narrow) %v3998_v46, 16 }
 0x57a   :  { %v665_v6 = vpop.trf.xlu1 }
 0x57e   :  { %v666_v7 = vpop.trf.xlu1 }
 0x57f   :  { %v4010_v8 = vpack.i.bf16 %v666_v7, %v665_v6 }
 0x5aa   :  { %1057 = vadd.xlane.f32.xlu0 %v1056_v63 }
 0x5ae   :  { %1063 = vadd.xlane.f32.xlu0 %v1062_v62 }
 0x5b2   :  { %1069 = vadd.xlane.f32.xlu0 %v1068_v1 }
 0x5b6   :  { %1072 = vadd.xlane.f32.xlu0 %v1071_v3 }
 0x5ba   :  { %1075 = vadd.xlane.f32.xlu0 %v1074_v5 }
 0x5e7   :  { %4011 = vxpose.xlu0.b32.start.end [1/1] (short) (narrow) %v4010_v8, 16 }
 0x5f9   :  { %v4000_v9 = vpop.trf.xlu0 }
 0x5fa   :  { %v4004_v10 = vunpack.i.h.bf16 %v4000_v9  ;;  %v4001_v11 = vunpack.i.l.bf16 %v4000_v9 }
 0x5fd   :  { %v4005_v12 = vpop.trf.xlu0 }
 0x5fe   :  { %v4009_v13 = vunpack.i.h.bf16 %v4005_v12  ;;  %v4006_v14 = vunpack.i.l.bf16 %v4005_v12 }
 0x600   :  { %v1097_v15 = vpack.c.bf16 %v4006_v14, %v4001_v11  ;;  %v1098_v17 = vpack.c.bf16 %v4009_v13, %v4004_v10  ;;  %v4136_v10 = vld [vmem:[%s4906_s10] sm:$0xff]   ;;  %v4137_v14 = vld [vmem:[%s4906_s10 + $0x8] sm:$0xff]  }
 0x602   :  { %3788 = vmatpush3.bf16.msra.mxu1 %v1097_v15  ;;  %3794 = vmatpush3.bf16.msra.mxu0 %v1098_v17 }
 0x603   :  { %3799 = vmatprep.subr.bf16.mxu1 %v4280_v16  ;;  %3805 = vmatprep.subr.bf16.mxu0 %v4280_v16 }
 0x637   :  { %v1058_v18 = vpop.xlane.xlu0 %1057 }
 0x638   :  { %4182 = vrcp.f32 %v1058_v18 }
 0x639   :  { %4184 = vrcp.f32 %v1061_v41 }
 0x63b   :  { %v1064_v19 = vpop.xlane.xlu0 %1063 }
 0x63c   :  { %4186 = vrcp.f32 %v1064_v19 }
 0x63f   :  { %v1070_v35 = vpop.xlane.xlu0 %1069 }
 0x640   :  { %4188 = vrcp.f32 %v1070_v35 }
 0x642   :  { %v4183_v21 = vpop.eup %4182 }
 0x643   :  { %v1086_v23 = vmul.f32 %v4183_v21, %v4171_v60  ;;  %v4185_v24 = vpop.eup %4184  ;;  %v1073_v27 = vpop.xlane.xlu0 %1072 }
 0x644   :  { %v1087_v28 = vmul.f32 %v4185_v24, %v4529_v30 }
 0x645   :  { %v1093_v25 = vpack.c.bf16 %v1086_v23, %v1085_v22  ;;  %v3564_v22 = vld [vmem:[%s4907_s11] ss:$0 sm:$0xff] }
 0x646   :  { %v4187_v26 = vpop.eup %4186 }
 0x647   :  { %v1088_v29 = vmul.f32 %v4187_v26, %v4173_v57  ;;  %3790 = vmatmul.mubr.msk.bf16.vlgmr.msra.gmra.mrb[12].mxu1 %vm1004_vm3, %v1093_v25  ;;  %v1076_v36 = vpop.xlane.xlu0 %1075 }
 0x648   :  { %3801 = vmatprep.mubr.msk.bf16.mxu1 %vm4281_vm1, %v4280_v16  ;;  %4190 = vrcp.f32 %v1076_v36 }
 0x649   :  { %v1094_v31 = vpack.c.bf16 %v1088_v29, %v1087_v28  ;;  %4192 = vrcp.f32 %v4542_v42 }
 0x64a   :  { %4194 = vrcp.f32 %v1073_v27  ;;  %v4189_v37 = vpop.eup %4188 }
 0x64b   :  { %3796 = vmatmul.mubr.msk.bf16.vlgmr.msra.gmra.mrb[16].mxu0 %vm1004_vm3, %v1094_v31  ;;  %v1090_v48 = vmul.f32 %v4189_v37, %v4548_v0 }
 0x64c   :  { %3807 = vmatprep.mubr.msk.bf16.mxu0 %vm4281_vm1, %v4280_v16 }
 0x652   :  { %v4191_v38 = vpop.eup %4190 }
 0x653   :  { %v4193_v39 = vpop.eup %4192  ;;  %v1092_v49 = vmul.f32 %v4191_v38, %v4179_v4 }
 0x654   :  { %v4195_v44 = vpop.eup %4194  ;;  %v1089_v51 = vmul.f32 %v4193_v39, %v4533_v32 }
 0x655   :  { %v1091_v42 = vmul.f32 %v4195_v44, %v4552_v2 }
 0x656   :  { %v1095_v56 = vpack.c.bf16 %v1090_v48, %v1089_v51 }
 0x657   :  { %v1096_v52 = vpack.c.bf16 %v1092_v49, %v1091_v42 }
 0x667   :  { %v4012_v30 = vpop.trf.xlu0 }
 0x668   :  { %v4016_v40 = vunpack.i.h.bf16 %v4012_v30  ;;  %v4013_v41 = vunpack.i.l.bf16 %v4012_v30 }
 0x66b   :  { %v4017_v43 = vpop.trf.xlu0 }
 0x66c   :  { %v4021_v46 = vunpack.i.h.bf16 %v4017_v43  ;;  %v4018_v47 = vunpack.i.l.bf16 %v4017_v43 }
 0x66e   :  { %v1099_v50 = vpack.c.bf16 %v4018_v47, %v4013_v41  ;;  %v1100_v54 = vpack.c.bf16 %v4021_v46, %v4016_v40  ;;  %v4139_v47 = vld [vmem:[%s4910_s14 + $0x8] sm:$0xff]  }
 0x670   :  { %3800 = vmatpush3.bf16.msra.mxu1 %v1099_v50  ;;  %3806 = vmatpush3.bf16.msra.mxu0 %v1100_v54 }
 0x671   :  { %3811 = vmatprep.subr.bf16.mxu1 %v4280_v16  ;;  %3819 = vmatprep.subr.bf16.mxu0 %v4280_v16 }
 0x673   :  { %3802 = vmatmul.mubr.msk.bf16.vlgmr.msra.gmra.mrb[16].mxu1 %vm1004_vm3, %v1095_v56  ;;  %3808 = vmatmul.mubr.msk.bf16.vlgmr.msra.gmra.mrb[20].mxu0 %vm1004_vm3, %v1096_v52 }
 0x674   :  { %3815 = vmatprep.mubr.msk.bf16.mxu1 %vm4281_vm1, %v4280_v16  ;;  %3823 = vmatprep.mubr.msk.bf16.mxu0 %vm4281_vm1, %v4280_v16 }
 0x675   :  { %3812 = vmatpush3.bf16.msra.mxu1 %v4136_v10 }
 0x676   :  { %3813 = vmatprep.subr.bf16.mxu1 %v4280_v16 }
 0x679   :  { %3814 = vmatpush3.bf16.msra.mxu1 %v4137_v14 }
 0x67a   :  { %3827 = vmatprep.subr.bf16.mxu1 %v4280_v16 }
 0x71a   :  { %v1138_v32 = vpop.f32.mrb[12].mxu1 }
 0x71b   :  { %v3791_v53 = vpop.f32.mrb[13].mxu1 }
 0x71c   :  { %v1141_v55 = vpop.f32.mrb[14].mxu1 }
 0x71d   :  { %v3792_v58 = vpop.f32.mrb[15].mxu1 }
 0x71e   :  { %v1182_v59 = vpop.f32.mrb[16].mxu0 }
 0x71f   :  { %v4022_v60 = vpack.i.bf16 %v1182_v59, %v1138_v32  ;;  %v3797_v61 = vpop.f32.mrb[17].mxu0  ;;  %v3568_v32 = vld [vmem:[%s4908_s12] ss:$0 sm:$0xff] }
 0x720   :  { %v1185_v63 = vpop.f32.mrb[18].mxu0  ;;  %v3569_v59 = vld [vmem:[%s4909_s13] ss:$0 sm:$0xff] }
 0x721   :  { %v4024_v57 = vpack.i.bf16 %v1185_v63, %v1141_v55  ;;  %4023 = vxpose.xlu1.b32.start [1/2] (short) (narrow) %v4022_v60, 8  ;;  %v3798_v62 = vpop.f32.mrb[19].mxu0 }
 0x722   :  { %v4140_v62 = vld [vmem:[%s4912_s16] sm:$0xff]  }
 0x725   :  { %4025 = vxpose.xlu1.b32.end [2/2] (short) (narrow) %v4024_v57, 8 }
 0x746   :  { %v1226_v0 = vpop.f32.mrb[16].mxu1  ;;  %v1270_v1 = vpop.f32.mrb[20].mxu0 }
 0x747   :  { %v4031_v2 = vpack.i.bf16 %v1270_v1, %v1226_v0  ;;  %v3803_v3 = vpop.f32.mrb[17].mxu1  ;;  %v3809_v4 = vpop.f32.mrb[21].mxu0  ;;  %v4141_v0 = vld [vmem:[%s4912_s16 + $0x8] sm:$0xff]   ;;  %v4142_v1 = vld [vmem:[%s4912_s16 + $0x10] sm:$0xff]  }
 0x748   :  { %v1229_v5 = vpop.f32.mrb[18].mxu1  ;;  %v1273_v6 = vpop.f32.mrb[22].mxu0  ;;  %v3570_v3 = vld [vmem:[%s4911_s15] ss:$0 sm:$0xff] }
 0x749   :  { %v4033_v7 = vpack.i.bf16 %v1273_v6, %v1229_v5  ;;  %v3804_v8 = vpop.f32.mrb[19].mxu1  ;;  %4032 = vxpose.xlu0.b32.start [1/2] (short) (narrow) %v4031_v2, 8  ;;  %v3810_v9 = vpop.f32.mrb[23].mxu0  ;;  %v4143_v2 = vld [vmem:[%s4912_s16 + $0x18] sm:$0xff]  }
 0x74d   :  { %4034 = vxpose.xlu0.b32.end [2/2] (short) (narrow) %v4033_v7, 8 }
 0x7a1   :  { %v4026_v11 = vpop.trf.xlu1 }
 0x7a2   :  { %v4027_v12 = vunpack.i.l.bf16 %v4026_v11  ;;  %v4030_v13 = vunpack.i.h.bf16 %v4026_v11 }
 0x7a4   :  { %1405 = vxpose.xlu1.b32.start [1/4] (short) (narrow) %v4027_v12, 16 }
 0x7a8   :  { %1406 = vxpose.xlu1.b32.cont [2/4] (short) (narrow) %v4030_v13, 16 }
 0x7c9   :  { %v4035_v15 = vpop.trf.xlu0 }
 0x7ca   :  { %v4036_v17 = vunpack.i.l.bf16 %v4035_v15  ;;  %v4039_v18 = vunpack.i.h.bf16 %v4035_v15 }
 0x7cc   :  { %1407 = vxpose.xlu1.b32.cont [3/4] (short) (narrow) %v4036_v17, 16 }
 0x7d0   :  { %1408 = vxpose.xlu1.b32.end [4/4] (short) (narrow) %v4039_v18, 16 }
 0x844   :  { %v1421_v19 = vpop.trf.xlu1 }
 0x848   :  { %v1422_v20 = vpop.trf.xlu1 }
 0x849   :  { %v1437_v21 = vpack.c.bf16 %v1422_v20, %v1421_v19 }
 0x84b   :  { %3816 = vmatmul.mubr.msk.bf16.vlgmr.msra.gmra.mrb[20].mxu1 %vm83_vm0, %v1437_v21 }
 0x84c   :  { %3835 = vmatprep.mubr.msk.bf16.mxu1 %vm4281_vm1, %v4280_v16  ;;  %3828 = vmatpush3.bf16.msra.mxu1 %v4140_v62  ;;  %v3580_v62 = vld [vmem:[%s4914_s18] ss:$0 sm:$0xff] }
 0x84d   :  { %3829 = vmatprep.subr.bf16.mxu1 %v4280_v16 }
 0x850   :  { %3830 = vmatpush3.bf16.msra.mxu1 %v4141_v0 }
 0x851   :  { %3831 = vmatprep.subr.bf16.mxu1 %v4280_v16 }
 0x854   :  { %3832 = vmatpush3.bf16.msra.mxu1 %v4142_v1 }
 0x855   :  { %3833 = vmatprep.subr.bf16.mxu1 %v4280_v16 }
 0x858   :  { %3834 = vmatpush3.bf16.msra.mxu1 %v4143_v2 }
 0x859   :  { %3855 = vmatprep.subr.bf16.mxu1 %v4280_v16 }
 0x91e   :  { %v1498_v23 = vpop.f32.mrb[20].mxu1 }
 0x91f   :  { %v1499_v24 = vadd.f32 %v3564_v22, %v1498_v23  ;;  %v3817_v25 = vpop.f32.mrb[21].mxu1 }
 0x920   :  { %v1501_v26 = vpop.f32.mrb[22].mxu1 }
 0x921   :  { %v1502_v28 = vadd.f32 %v3564_v22, %v1501_v26  ;;  %v3818_v29 = vpop.f32.mrb[23].mxu1  ;;  %v1505_v31 = vadd.f32 %v1499_v24, %v4446_v33 }
 0x923   :  { %v1509_v35 = vsel %vm83_vm0, %v1505_v31, 0.0  ;;  %v1506_v27 = vadd.f32 %v1502_v28, %v4448_v34  ;;  %v4138_v34 = vld [vmem:[%s4910_s14] sm:$0xff]  }
 0x924   :  { %1510 = vadd.xlane.f32.xlu0 %v1509_v35  ;;  %3820 = vmatpush3.bf16.msra.mxu0 %v4138_v34  ;;  %v3574_v35 = vld [vmem:[%s4913_s17] ss:$0 sm:$0xff] }
 0x925   :  { %v1512_v36 = vsel %vm83_vm0, %v1506_v27, 0.0  ;;  %3821 = vmatprep.subr.bf16.mxu0 %v4280_v16 }
 0x926   :  { %1513 = vadd.xlane.f32.xlu1 %v1512_v36 }
 0x928   :  { %3822 = vmatpush3.bf16.msra.mxu0 %v4139_v47 }
 0x929   :  { %3839 = vmatprep.subr.bf16.mxu0 %v4280_v16 }
 0x9b1   :  { %v1511_v30 = vpop.xlane.xlu0 %1510 }
 0x9b2   :  { %v1515_v37 = vmul.f32 0.03125, %v1511_v30 }
 0x9b3   :  { %v1514_v38 = vpop.xlane.xlu1 %1513 }
 0x9b4   :  { %v1517_v39 = vsub.f32 %v1505_v31, %v1515_v37  ;;  %v1516_v40 = vmul.f32 0.03125, %v1514_v38 }
 0x9b6   :  { %v1518_v41 = vsub.f32 %v1506_v27, %v1516_v40  ;;  %v1519_v43 = vmul.f32 %v1517_v39, %v1517_v39 }
 0x9b8   :  { %v1521_v44 = vsel %vm83_vm0, %v1519_v43, 0.0  ;;  %v1520_v46 = vmul.f32 %v1518_v41, %v1518_v41 }
 0x9b9   :  { %1522 = vadd.xlane.f32.xlu0 %v1521_v44 }
 0x9ba   :  { %v1524_v33 = vsel %vm83_vm0, %v1520_v46, 0.0 }
 0x9bd   :  { %1525 = vadd.xlane.f32.xlu0 %v1524_v33 }
 0xa46   :  { %v1523_v48 = vpop.xlane.xlu0 %1522 }
 0xa47   :  { %v1527_v49 = vmul.f32 0.03125, %v1523_v48 }
 0xa49   :  { %v1529_v50 = vadd.f32 1e-12, %v1527_v49 }
 0xa4a   :  { %v1526_v54 = vpop.xlane.xlu0 %1525 }
 0xa4b   :  { %4196 = vrsqrt.f32 %v1529_v50  ;;  %v1528_v51 = vmul.f32 0.03125, %v1526_v54 }
 0xa4d   :  { %v1530_v42 = vadd.f32 1e-12, %v1528_v51 }
 0xa4f   :  { %4198 = vrsqrt.f32 %v1530_v42 }
 0xa55   :  { %v4197_v56 = vpop.eup %4196 }
 0xa56   :  { %v1533_v52 = vmul.f32 %v4197_v56, %v1517_v39  ;;  %v4144_v56 = vld [vmem:[%s4938_s0 + $0x10] sm:$0xff]  }
 0xa58   :  { %v1541_v55 = vmul.f32 %v3568_v32, %v1533_v52  ;;  %v4145_v52 = vld [vmem:[%s4942_s30 + $0x10] sm:$0xff]  }
 0xa59   :  { %v4199_v53 = vpop.eup %4198 }
 0xa5a   :  { %v1534_v58 = vmul.f32 %v4199_v53, %v1518_v41  ;;  %v1549_v61 = vadd.f32 %v3569_v59, %v1541_v55  ;;  %v4147_v53 = vld [vmem:[%s4942_s30 + $0x18] sm:$0xff]  }
 0xa5c   :  { %v1542_v60 = vmul.f32 %v3568_v32, %v1534_v58  ;;  %v4146_v32 = vld [vmem:[%s4938_s0 + $0x18] sm:$0xff]  }
 0xa5e   :  { %v1550_v63 = vadd.f32 %v3569_v59, %v1542_v60 }
 0xa60   :  { %v1551_v57 = vpack.c.bf16 %v1550_v63, %v1549_v61 }
 0xa62   :  { %3824 = vmatmul.mubr.msk.bf16.vlgmr.msra.gmra.mrb[24].mxu0 %vm83_vm0, %v1551_v57 }
 0xa63   :  { %3843 = vmatprep.mubr.msk.bf16.mxu0 %vm4281_vm1, %v4280_v16  ;;  %3840 = vmatpush3.bf16.msra.mxu0 %v4144_v56 }
 0xa64   :  { %3841 = vmatprep.subr.bf16.mxu0 %v4280_v16 }
 0xa67   :  { %3842 = vmatpush3.bf16.msra.mxu0 %v4146_v32 }
 0xa68   :  { %3847 = vmatprep.subr.bf16.mxu0 %v4280_v16 }
 0xb35   :  { %v1612_v4 = vpop.f32.mrb[24].mxu0 }
 0xb36   :  { %v1613_v5 = vadd.f32 %v3570_v3, %v1612_v4  ;;  %v3825_v6 = vpop.f32.mrb[25].mxu0  ;;  %v3581_v4 = vld [vmem:[%s4915_s19] ss:$0 sm:$0xff] }
 0xb37   :  { %v1615_v7 = vpop.f32.mrb[26].mxu0 }
 0xb38   :  { %v1619_v8 = vmul.f32 %v1613_v5, %v1613_v5  ;;  %v1616_v9 = vadd.f32 %v3570_v3, %v1615_v7  ;;  %v3826_v10 = vpop.f32.mrb[27].mxu0 }
 0xb39   :  { %v4149_v10 = vld [vmem:[%s4939_s3 + $0x18] sm:$0xff]  }
 0xb3a   :  { %v1621_v11 = vmul.f32 %v1619_v8, %v1613_v5  ;;  %v1620_v12 = vmul.f32 %v1616_v9, %v1616_v9  ;;  %v4148_v8 = vld [vmem:[%s4939_s3 + $0x10] sm:$0xff]  }
 0xb3c   :  { %v1623_v13 = vmul.f32 0.044715, %v1621_v11  ;;  %v1622_v14 = vmul.f32 %v1620_v12, %v1616_v9  ;;  %v3587_v11 = vld [vmem:[%s4943_s5 + $0x1] ss:$0 sm:$0xff] }
 0xb3e   :  { %v1625_v15 = vadd.f32 %v1623_v13, %v1613_v5  ;;  %v1624_v17 = vmul.f32 0.044715, %v1622_v14 }
 0xb40   :  { %v1627_v18 = vmul.f32 0.7978846, %v1625_v15  ;;  %v1626_v19 = vadd.f32 %v1624_v17, %v1616_v9 }
 0xb42   :  { %4200 = vtanh.f32 %v1627_v18  ;;  %v1628_v20 = vmul.f32 0.7978846, %v1626_v19 }
 0xb44   :  { %4202 = vtanh.f32 %v1628_v20 }
 0xb4c   :  { %v4201_v21 = vpop.eup %4200 }
 0xb4d   :  { %v1631_v22 = vadd.f32 1.0, %v4201_v21 }
 0xb4e   :  { %v4203_v23 = vpop.eup %4202 }
 0xb4f   :  { %v1633_v24 = vmul.f32 0.5, %v1631_v22  ;;  %v1632_v25 = vadd.f32 1.0, %v4203_v23 }
 0xb51   :  { %v1634_v26 = vmul.f32 0.5, %v1632_v25  ;;  %v1635_v28 = vmul.f32 %v1633_v24, %v1613_v5  ;;  %v3596_v24 = vld [vmem:[%s4944_s28 + $0x1] ss:$0 sm:$0xff] }
 0xb53   :  { %v1636_v29 = vmul.f32 %v1634_v26, %v1616_v9 }
 0xb55   :  { %v1637_v31 = vpack.c.bf16 %v1636_v29, %v1635_v28 }
 0xb57   :  { %3836 = vmatmul.mubr.msk.bf16.vlgmr.msra.gmra.mrb[24].mxu1 %vm1677_vm4, %v1637_v31 }
 0xb58   :  { %3859 = vmatprep.mubr.msk.bf16.mxu1 %vm4281_vm1, %v4280_v16  ;;  %3856 = vmatpush3.bf16.msra.mxu1 %v4145_v52 }
 0xb59   :  { %3857 = vmatprep.subr.bf16.mxu1 %v4280_v16 }
 0xb5c   :  { %3858 = vmatpush3.bf16.msra.mxu1 %v4147_v53 }
 0xb5d   :  { %3869 = vmatprep.subr.bf16.mxu1 %v4280_v16 }
 0xc2a   :  { %v1715_v27 = vpop.f32.mrb[24].mxu1 }
 0xc2b   :  { %v1716_v36 = vadd.f32 %v3574_v35, %v1715_v27  ;;  %v3837_v30 = vpop.f32.mrb[25].mxu1 }
 0xc2c   :  { %v1718_v37 = vpop.f32.mrb[26].mxu1 }
 0xc2d   :  { %v1719_v38 = vadd.f32 %v3574_v35, %v1718_v37  ;;  %v3838_v39 = vpop.f32.mrb[27].mxu1  ;;  %v1722_v40 = vadd.f32 %v1716_v36, %v1549_v61 }
 0xc2f   :  { %v1726_v41 = vsel %vm83_vm0, %v1722_v40, 0.0  ;;  %v1723_v43 = vadd.f32 %v1719_v38, %v1550_v63 }
 0xc30   :  { %1727 = vadd.xlane.f32.xlu0 %v1726_v41 }
 0xc31   :  { %v1729_v44 = vsel %vm83_vm0, %v1723_v43, 0.0 }
 0xc32   :  { %1730 = vadd.xlane.f32.xlu1 %v1729_v44 }
 0xcbd   :  { %v1728_v46 = vpop.xlane.xlu0 %1727 }
 0xcbe   :  { %v1732_v33 = vmul.f32 0.03125, %v1728_v46 }
 0xcbf   :  { %v1731_v34 = vpop.xlane.xlu1 %1730 }
 0xcc0   :  { %v1734_v47 = vsub.f32 %v1722_v40, %v1732_v33  ;;  %v1733_v48 = vmul.f32 0.03125, %v1731_v34 }
 0xcc2   :  { %v1735_v49 = vsub.f32 %v1723_v43, %v1733_v48  ;;  %v1736_v50 = vmul.f32 %v1734_v47, %v1734_v47 }
 0xcc4   :  { %v1738_v54 = vsel %vm83_vm0, %v1736_v50, 0.0  ;;  %v1737_v51 = vmul.f32 %v1735_v49, %v1735_v49 }
 0xcc5   :  { %1739 = vadd.xlane.f32.xlu0 %v1738_v54 }
 0xcc6   :  { %v1741_v42 = vsel %vm83_vm0, %v1737_v51, 0.0 }
 0xcc7   :  { %1742 = vadd.xlane.f32.xlu1 %v1741_v42 }
 0xd52   :  { %v1740_v55 = vpop.xlane.xlu0 %1739 }
 0xd53   :  { %v1744_v58 = vmul.f32 0.03125, %v1740_v55 }
 0xd54   :  { %v1743_v59 = vpop.xlane.xlu1 %1742 }
 0xd55   :  { %v1746_v60 = vadd.f32 1e-12, %v1744_v58  ;;  %v1745_v61 = vmul.f32 0.03125, %v1743_v59 }
 0xd57   :  { %4204 = vrsqrt.f32 %v1746_v60  ;;  %v1747_v63 = vadd.f32 1e-12, %v1745_v61 }
 0xd59   :  { %4206 = vrsqrt.f32 %v1747_v63 }
 0xd61   :  { %v4205_v57 = vpop.eup %4204 }
 0xd62   :  { %v1750_v0 = vmul.f32 %v4205_v57, %v1734_v47 }
 0xd63   :  { %v4207_v1 = vpop.eup %4206 }
 0xd64   :  { %v1758_v2 = vmul.f32 %v3580_v62, %v1750_v0  ;;  %v1751_v3 = vmul.f32 %v4207_v1, %v1735_v49 }
 0xd66   :  { %v1759_v5 = vmul.f32 %v3580_v62, %v1751_v3  ;;  %v4667_v6 = vadd.f32 %v3581_v4, %v1758_v2 }
 0xd68   :  { %v4669_v7 = vadd.f32 %v3581_v4, %v1759_v5 }
 0xd6a   :  { %v1768_v9 = vpack.c.bf16 %v4669_v7, %v4667_v6 }
 0xd6c   :  { %3844 = vmatmul.mubr.msk.bf16.vlgmr.msra.gmra.mrb[28].mxu0 %vm83_vm0, %v1768_v9  ;;  %3860 = vmatmul.mubr.msk.bf16.vlgmr.msra.gmra.mrb[28].mxu1 %vm83_vm0, %v1768_v9 }
 0xd6d   :  { %3848 = vmatpush3.bf16.msra.mxu0 %v4148_v8  ;;  %3851 = vmatprep.mubr.msk.bf16.mxu0 %vm4281_vm1, %v4280_v16 }
 0xd6e   :  { %3849 = vmatprep.subr.bf16.mxu0 %v4280_v16  ;;  %3871 = vmatprep.mubr.msk.bf16.mxu1 %vm4281_vm1, %v4280_v16 }
 0xd71   :  { %3850 = vmatpush3.bf16.msra.mxu0 %v4149_v10 }
 0xd72   :  { %3863 = vmatprep.subr.bf16.mxu0 %v4280_v16 }
 0xd74   :  { %3852 = vmatmul.mubr.msk.bf16.vlgmr.msra.gmra.mrb[32].mxu0 %vm83_vm0, %v1768_v9 }
 0xd75   :  { %3865 = vmatprep.mubr.msk.bf16.mxu0 %vm4281_vm1, %v4280_v16 }
 0xe3f   :  { %v1831_v12 = vpop.f32.mrb[28].mxu0  ;;  %v4693_v13 = vpop.f32.mrb[28].mxu1 }
 0xe40   :  { %v1832_v14 = vadd.f32 %v3587_v11, %v1831_v12  ;;  %v3845_v15 = vpop.f32.mrb[29].mxu0  ;;  %v3861_v17 = vpop.f32.mrb[29].mxu1 }
 0xe41   :  { %v1834_v18 = vpop.f32.mrb[30].mxu0  ;;  %v4695_v19 = vpop.f32.mrb[30].mxu1 }
 0xe42   :  { %v1970_v20 = vmul.f32 0.35355338, %v1832_v14  ;;  %v1835_v21 = vadd.f32 %v3587_v11, %v1834_v18  ;;  %v3846_v22 = vpop.f32.mrb[31].mxu0  ;;  %v3862_v23 = vpop.f32.mrb[31].mxu1 }
 0xe44   :  { %1972 = vxpose.xlu1.b32.start [1/2] (short) (narrow) %v1970_v20, 32  ;;  %v1971_v25 = vmul.f32 0.35355338, %v1835_v21 }
 0xe47   :  { %v1897_v26 = vpop.f32.mrb[32].mxu0 }
 0xe48   :  { %v1898_v28 = vadd.f32 %v3596_v24, %v1897_v26  ;;  %1973 = vxpose.xlu1.b32.end [2/2] (short) (narrow) %v1971_v25, 32  ;;  %v3853_v29 = vpop.f32.mrb[33].mxu0 }
 0xe49   :  { %v1900_v31 = vpop.f32.mrb[34].mxu0 }
 0xe4a   :  { %2132 = vxpose.xlu0.b32.start [1/2] (short) (narrow) %v1898_v28, 32  ;;  %v3854_v35 = vpop.f32.mrb[35].mxu0  ;;  %v1901_v27 = vadd.f32 %v3596_v24, %v1900_v31  ;;  %v4254_v31 = vld [vmem:[%s4945_s29] sm:$0xff] }
 0xe4e   :  { %2133 = vxpose.xlu0.b32.end [2/2] (short) (narrow) %v1901_v27, 32  ;;  %v4255_v27 = vld [vmem:[%s4945_s29 + $0x8] sm:$0xff] }
 0xec4   :  { %v1988_v36 = vpop.trf.xlu1 }
 0xec8   :  { %v1989_v37 = vpop.trf.xlu1 }
 0xeca   :  { %v2148_v30 = vpop.trf.xlu0 }
 0xecc   :  { %v1990_v40 = vpop.trf.xlu1 }
 0xece   :  { %v2149_v38 = vpop.trf.xlu0 }
 0xecf   :  { %v4040_v39 = vpack.i.bf16 %v2149_v38, %v2148_v30 }
 0xed0   :  { %v1991_v33 = vpop.trf.xlu1 }
 0xed1   :  { %4041 = vxpose.xlu0.b32.start.end [1/1] (short) (narrow) %v4040_v39, 16  ;;  %v4076_v34 = vpack.i.bf16 %v1991_v33, %v1990_v40 }
 0xed2   :  { %v2150_v41 = vpop.trf.xlu0 }
 0xed3   :  { %v4052_v43 = vpack.i.bf16 %v2150_v41, %v1988_v36 }
 0xed5   :  { %4053 = vxpose.xlu1.b32.start.end [1/1] (short) (narrow) %v4052_v43, 16 }
 0xed6   :  { %v2151_v44 = vpop.trf.xlu0 }
 0xed7   :  { %v4064_v46 = vpack.i.bf16 %v2151_v44, %v1989_v37 }
 0xed9   :  { %4065 = vxpose.xlu0.b32.start.end [1/1] (short) (narrow) %v4064_v46, 16 }
 0xede   :  { %4077 = vxpose.xlu0.b32.start.end [1/1] (short) (narrow) %v4076_v34, 16 }
 0xf51   :  { %v4042_v47 = vpop.trf.xlu0 }
 0xf52   :  { %v4046_v50 = vunpack.i.h.bf16 %v4042_v47  ;;  %v4043_v54 = vunpack.i.l.bf16 %v4042_v47 }
 0xf55   :  { %v4054_v48 = vpop.trf.xlu1  ;;  %v4047_v49 = vpop.trf.xlu0 }
 0xf56   :  { %v4051_v51 = vunpack.i.h.bf16 %v4047_v49  ;;  %v4048_v42 = vunpack.i.l.bf16 %v4047_v49  ;;  %v4058_v55 = vunpack.i.h.bf16 %v4054_v48  ;;  %v4055_v57 = vunpack.i.l.bf16 %v4054_v48 }
 0xf58   :  { %v2456_v32 = vpack.c.bf16 %v4048_v42, %v4043_v54  ;;  %v2457_v53 = vpack.c.bf16 %v4051_v51, %v4046_v50 }
 0xf59   :  { %v4059_v56 = vpop.trf.xlu1  ;;  %v4066_v52 = vpop.trf.xlu0 }
 0xf5a   :  { %v4063_v58 = vunpack.i.h.bf16 %v4059_v56  ;;  %v4070_v59 = vunpack.i.h.bf16 %v4066_v52  ;;  %v4067_v60 = vunpack.i.l.bf16 %v4066_v52  ;;  %v2464_v61 = vsel %vm815_vm2, %v2456_v32, 0 }
 0xf5b   :  { %v2511_v63 = vsel %vm815_vm2, %v2457_v53, 0  ;;  %v4060_v62 = vunpack.i.l.bf16 %v4059_v56  ;;  %3864 = vmatpush3.bf16.xpose.msra.mxu0 %v2464_v61 }
 0xf5c   :  { %3870 = vmatpush3.bf16.xpose.msra.mxu1 %v2511_v63  ;;  %3875 = vmatprep.subr.bf16.mxu0 %v4280_v16  ;;  %v2458_v4 = vpack.c.bf16 %v4063_v58, %v4058_v55 }
 0xf5d   :  { %v4071_v0 = vpop.trf.xlu0  ;;  %3881 = vmatprep.subr.bf16.mxu1 %v4280_v16  ;;  %v2452_v9 = vpack.c.bf16 %v4060_v62, %v4055_v57 }
 0xf5e   :  { %v4075_v1 = vunpack.i.h.bf16 %v4071_v0  ;;  %v4072_v2 = vunpack.i.l.bf16 %v4071_v0  ;;  %v2558_v14 = vsel %vm815_vm2, %v2458_v4, 0 }
 0xf60   :  { %v2453_v3 = vpack.c.bf16 %v4072_v2, %v4067_v60  ;;  %v2459_v5 = vpack.c.bf16 %v4075_v1, %v4070_v59 }
 0xf61   :  { %v4078_v8 = vpop.trf.xlu0 }
 0xf62   :  { %v2605_v10 = vsel %vm815_vm2, %v2459_v5, 0  ;;  %v4082_v11 = vunpack.i.h.bf16 %v4078_v8  ;;  %v4079_v12 = vunpack.i.l.bf16 %v4078_v8  ;;  %3866 = vmatmul.mubr.msk.bf16.vlgmr.msra.gmra.mrb[36].mxu0 %vm815_vm2, %v2452_v9 }
 0xf63   :  { %3872 = vmatmul.mubr.msk.bf16.vlgmr.msra.gmra.mrb[32].mxu1 %vm815_vm2, %v2453_v3  ;;  %3876 = vmatpush3.bf16.xpose.msra.mxu0 %v2558_v14 }
 0xf64   :  { %3882 = vmatpush3.bf16.xpose.msra.mxu1 %v2605_v10  ;;  %3877 = vmatprep.mubr.msk.bf16.mxu0 %vm4281_vm1, %v4280_v16  ;;  %v3605_v10 = vld [vmem:[%s4905_s9 + $0x1] ss:$0 sm:$0xff] }
 0xf65   :  { %v4083_v15 = vpop.trf.xlu0  ;;  %3883 = vmatprep.mubr.msk.bf16.mxu1 %vm4281_vm1, %v4280_v16  ;;  %3887 = vmatprep.subr.bf16.mxu0 %v4280_v16 }
 0xf66   :  { %v4087_v17 = vunpack.i.h.bf16 %v4083_v15  ;;  %v4084_v18 = vunpack.i.l.bf16 %v4083_v15  ;;  %3893 = vmatprep.subr.bf16.mxu1 %v4280_v16 }
 0xf68   :  { %v2454_v20 = vpack.c.bf16 %v4084_v18, %v4079_v12  ;;  %v2455_v21 = vpack.c.bf16 %v4087_v17, %v4082_v11  ;;  %v1964_v11 = vadd.f32 %v3605_v10, %v4693_v13  ;;  %v1967_v12 = vadd.f32 %v3605_v10, %v4695_v19 }
 0xf6a   :  { %3878 = vmatmul.mubr.msk.bf16.vlgmr.msra.gmra.mrb[40].mxu0 %vm815_vm2, %v2454_v20 }
 0xf6b   :  { %3884 = vmatmul.mubr.msk.bf16.vlgmr.msra.gmra.mrb[36].mxu1 %vm815_vm2, %v2455_v21  ;;  %3889 = vmatprep.mubr.msk.bf16.mxu0 %vm4281_vm1, %v4280_v16 }
 0xf6c   :  { %3895 = vmatprep.mubr.msk.bf16.mxu1 %vm4281_vm1, %v4280_v16 }
0x1035   :  { %v2500_v22 = vpop.f32.mrb[36].mxu0 }
0x1036   :  { %v2547_v23 = vpop.f32.mrb[32].mxu1  ;;  %v2501_v24 = vadd.f32 %v2500_v22, %v4502_v45  ;;  %v3867_v25 = vpop.f32.mrb[37].mxu0 }
0x1037   :  { %v3873_v26 = vpop.f32.mrb[33].mxu1  ;;  %v2503_v28 = vpop.f32.mrb[38].mxu0  ;;  %v2548_v35 = vadd.f32 %v4254_v31, %v2547_v23 }
0x1038   :  { %v2550_v29 = vpop.f32.mrb[34].mxu1  ;;  %v4727_v36 = vadd.f32 %v4255_v27, %v2503_v28  ;;  %v3868_v30 = vpop.f32.mrb[39].mxu0  ;;  %v2648_v38 = vsel %vm1004_vm3, %v2501_v24, -inf }
0x1039   :  { %v3874_v37 = vpop.f32.mrb[35].mxu1  ;;  %2649 = vmax.xlane.f32.xlu1 %v2648_v38  ;;  %v4732_v39 = vadd.f32 %v4255_v27, %v2550_v29  ;;  %v2654_v40 = vsel %vm1004_vm3, %v2548_v35, -inf }
0x103a   :  { %v2651_v45 = vsel %vm1004_vm3, %v4727_v36, -inf }
0x103b   :  { %2652 = vmax.xlane.f32.xlu0 %v2651_v45  ;;  %v2657_v54 = vsel %vm1004_vm3, %v4732_v39, -inf }
0x103d   :  { %2655 = vmax.xlane.f32.xlu1 %v2654_v40  ;;  %v2594_v43 = vpop.f32.mrb[40].mxu0 }
0x103e   :  { %v2641_v41 = vpop.f32.mrb[36].mxu1  ;;  %v3879_v44 = vpop.f32.mrb[41].mxu0  ;;  %v2595_v47 = vadd.f32 %v4254_v31, %v2594_v43 }
0x103f   :  { %v3885_v46 = vpop.f32.mrb[37].mxu1  ;;  %v2597_v33 = vpop.f32.mrb[42].mxu0  ;;  %v2642_v56 = vadd.f32 %v4254_v31, %v2641_v41 }
0x1040   :  { %v2644_v34 = vpop.f32.mrb[38].mxu1  ;;  %v2598_v48 = vadd.f32 %v4255_v27, %v2597_v33  ;;  %v3880_v49 = vpop.f32.mrb[43].mxu0  ;;  %v2660_v52 = vsel %vm1004_vm3, %v2595_v47, -inf }
0x1041   :  { %v3886_v50 = vpop.f32.mrb[39].mxu1  ;;  %2658 = vmax.xlane.f32.xlu1 %v2657_v54  ;;  %v2645_v51 = vadd.f32 %v4255_v27, %v2644_v34  ;;  %v2666_v53 = vsel %vm1004_vm3, %v2642_v56, -inf }
0x1042   :  { %v2663_v42 = vsel %vm1004_vm3, %v2598_v48, -inf }
0x1043   :  { %2664 = vmax.xlane.f32.xlu0 %v2663_v42  ;;  %v2669_v32 = vsel %vm1004_vm3, %v2645_v51, -inf }
0x1045   :  { %2661 = vmax.xlane.f32.xlu1 %v2660_v52 }
0x1047   :  { %2670 = vmax.xlane.f32.xlu0 %v2669_v32 }
0x1049   :  { %2667 = vmax.xlane.f32.xlu1 %v2666_v53 }
0x10c6   :  { %v2650_v55 = vpop.xlane.xlu1 %2649 }
0x10c7   :  { %v2672_v58 = vsub.f32 %v2501_v24, %v2650_v55 }
0x10c8   :  { %v2653_v23 = vpop.xlane.xlu0 %2652 }
0x10c9   :  { %v2680_v59 = vmul.f32 1.442695, %v2672_v58  ;;  %v2673_v24 = vsub.f32 %v4727_v36, %v2653_v23 }
0x10ca   :  { %v2656_v60 = vpop.xlane.xlu1 %2655 }
0x10cb   :  { %4208 = vpow2.f32 %v2680_v59  ;;  %v2674_v61 = vsub.f32 %v2548_v35, %v2656_v60  ;;  %v2682_v25 = vmul.f32 1.442695, %v2673_v24 }
0x10cd   :  { %v2684_v63 = vmul.f32 1.442695, %v2674_v61 }
0x10ce   :  { %v2659_v57 = vpop.xlane.xlu1 %2658 }
0x10cf   :  { %4210 = vpow2.f32 %v2684_v63  ;;  %v2675_v26 = vsub.f32 %v4732_v39, %v2659_v57 }
0x10d0   :  { %v2665_v13 = vpop.xlane.xlu0 %2664 }
0x10d1   :  { %v2686_v28 = vmul.f32 1.442695, %v2675_v26  ;;  %v2677_v19 = vsub.f32 %v2598_v48, %v2665_v13 }
0x10d2   :  { %v2662_v62 = vpop.xlane.xlu1 %2661 }
0x10d3   :  { %v2676_v0 = vsub.f32 %v2595_v47, %v2662_v62  ;;  %v2690_v29 = vmul.f32 1.442695, %v2677_v19 }
0x10d4   :  { %v2671_v35 = vpop.xlane.xlu0 %2670 }
0x10d5   :  { %v4741_v1 = vpop.eup %4208  ;;  %v2688_v2 = vmul.f32 1.442695, %v2676_v0  ;;  %v2679_v27 = vsub.f32 %v2645_v51, %v2671_v35 }
0x10d6   :  { %v2696_v3 = vsel %vm1004_vm3, %v4741_v1, 0.0  ;;  %v2668_v14 = vpop.xlane.xlu1 %2667 }
0x10d7   :  { %4212 = vpow2.f32 %v2688_v2  ;;  %2697 = vadd.xlane.f32.xlu1 %v2696_v3  ;;  %v2678_v31 = vsub.f32 %v2642_v56, %v2668_v14  ;;  %v2694_v38 = vmul.f32 1.442695, %v2679_v27 }
0x10d8   :  { %4214 = vpow2.f32 %v2682_v25 }
0x10d9   :  { %v4745_v4 = vpop.eup %4210  ;;  %4216 = vpow2.f32 %v2686_v28  ;;  %v2692_v30 = vmul.f32 1.442695, %v2678_v31 }
0x10da   :  { %v2702_v5 = vsel %vm1004_vm3, %v4745_v4, 0.0  ;;  %4218 = vpow2.f32 %v2690_v29 }
0x10db   :  { %2703 = vadd.xlane.f32.xlu1 %v2702_v5  ;;  %4220 = vpow2.f32 %v2692_v30 }
0x10dc   :  { %4222 = vpow2.f32 %v2694_v38 }
0x10e1   :  { %v4749_v8 = vpop.eup %4212 }
0x10e2   :  { %v2708_v9 = vsel %vm1004_vm3, %v4749_v8, 0.0  ;;  %v4215_v37 = vpop.eup %4214 }
0x10e3   :  { %2709 = vadd.xlane.f32.xlu1 %v2708_v9  ;;  %v2699_v45 = vsel %vm1004_vm3, %v4215_v37, 0.0  ;;  %v4217_v36 = vpop.eup %4216 }
0x10e4   :  { %v2705_v39 = vsel %vm1004_vm3, %v4217_v36, 0.0  ;;  %v4764_v40 = vpop.eup %4218 }
0x10e5   :  { %v2711_v41 = vsel %vm1004_vm3, %v4764_v40, 0.0  ;;  %v4768_v43 = vpop.eup %4220 }
0x10e6   :  { %v2714_v44 = vsel %vm1004_vm3, %v4768_v43, 0.0  ;;  %v4223_v46 = vpop.eup %4222 }
0x10e7   :  { %v2717_v33 = vsel %vm1004_vm3, %v4223_v46, 0.0 }
0x1116   :  { %2292 = vxpose.xlu1.b32.start [1/2] (short) (narrow) %v1964_v11, 32 }
0x111a   :  { %2293 = vxpose.xlu1.b32.end [2/2] (short) (narrow) %v1967_v12, 32 }
0x1164   :  { %v2698_v15 = vpop.xlane.xlu1 %2697 }
0x1165   :  { %4224 = vrcp.f32 %v2698_v15 }
0x1168   :  { %v2704_v17 = vpop.xlane.xlu1 %2703 }
0x116f   :  { %v4225_v58 = vpop.eup %4224 }
0x1170   :  { %v4758_v18 = vpop.xlane.xlu1 %2709  ;;  %v2728_v60 = vmul.f32 %v4225_v58, %v4741_v1 }
0x1196   :  { %v2308_v20 = vpop.trf.xlu1 }
0x119a   :  { %v2309_v21 = vpop.trf.xlu1 }
0x119b   :  { %v4088_v22 = vpack.i.bf16 %v2309_v21, %v2308_v20 }
0x119d   :  { %4089 = vxpose.xlu0.b32.start.end [1/1] (short) (narrow) %v4088_v22, 16 }
0x119e   :  { %v2310_v34 = vpop.trf.xlu1 }
0x11a2   :  { %v2311_v47 = vpop.trf.xlu1 }
0x11a3   :  { %v4100_v48 = vpack.i.bf16 %v2311_v47, %v2310_v34 }
0x11ce   :  { %2700 = vadd.xlane.f32.xlu0 %v2699_v45 }
0x11d2   :  { %2706 = vadd.xlane.f32.xlu0 %v2705_v39 }
0x11d6   :  { %2712 = vadd.xlane.f32.xlu0 %v2711_v41 }
0x11da   :  { %2715 = vadd.xlane.f32.xlu0 %v2714_v44 }
0x11de   :  { %2718 = vadd.xlane.f32.xlu0 %v2717_v33 }
0x120b   :  { %4101 = vxpose.xlu0.b32.start.end [1/1] (short) (narrow) %v4100_v48, 16 }
0x121d   :  { %v4090_v49 = vpop.trf.xlu0 }
0x121e   :  { %v4094_v50 = vunpack.i.h.bf16 %v4090_v49  ;;  %v4091_v54 = vunpack.i.l.bf16 %v4090_v49  ;;  %v4150_v49 = vld [vmem:[%s4906_s10 + $0x10] sm:$0xff]  }
0x1221   :  { %v4095_v51 = vpop.trf.xlu0 }
0x1222   :  { %v4099_v42 = vunpack.i.h.bf16 %v4095_v51  ;;  %v4096_v56 = vunpack.i.l.bf16 %v4095_v51 }
0x1224   :  { %v2740_v52 = vpack.c.bf16 %v4096_v56, %v4091_v54  ;;  %v2741_v32 = vpack.c.bf16 %v4099_v42, %v4094_v50  ;;  %v4151_v42 = vld [vmem:[%s4906_s10 + $0x18] sm:$0xff]  }
0x1226   :  { %3888 = vmatpush3.bf16.msra.mxu0 %v2740_v52  ;;  %3894 = vmatpush3.bf16.msra.mxu1 %v2741_v32 }
0x1227   :  { %3899 = vmatprep.subr.bf16.mxu0 %v4280_v16  ;;  %3905 = vmatprep.subr.bf16.mxu1 %v4280_v16 }
0x125b   :  { %v2701_v53 = vpop.xlane.xlu0 %2700 }
0x125c   :  { %4226 = vrcp.f32 %v2701_v53 }
0x125d   :  { %4228 = vrcp.f32 %v2704_v17 }
0x125f   :  { %v2707_v55 = vpop.xlane.xlu0 %2706 }
0x1260   :  { %4230 = vrcp.f32 %v2707_v55 }
0x1263   :  { %v2713_v5 = vpop.xlane.xlu0 %2712 }
0x1264   :  { %4232 = vrcp.f32 %v2713_v5 }
0x1266   :  { %v4227_v59 = vpop.eup %4226 }
0x1267   :  { %v2729_v61 = vmul.f32 %v4227_v59, %v4215_v37  ;;  %v4229_v63 = vpop.eup %4228  ;;  %v2716_v1 = vpop.xlane.xlu0 %2715  ;;  %v3622_v59 = vld [vmem:[%s4907_s11 + $0x1] ss:$0 sm:$0xff] }
0x1268   :  { %v2730_v0 = vmul.f32 %v4229_v63, %v4745_v4 }
0x1269   :  { %v2736_v57 = vpack.c.bf16 %v2729_v61, %v2728_v60 }
0x126a   :  { %v4231_v62 = vpop.eup %4230 }
0x126b   :  { %v2731_v2 = vmul.f32 %v4231_v62, %v4217_v36  ;;  %3890 = vmatmul.mubr.msk.bf16.vlgmr.msra.gmra.mrb[44].mxu0 %vm1004_vm3, %v2736_v57  ;;  %v2719_v9 = vpop.xlane.xlu0 %2718 }
0x126c   :  { %3901 = vmatprep.mubr.msk.bf16.mxu0 %vm4281_vm1, %v4280_v16  ;;  %4234 = vrcp.f32 %v2719_v9 }
0x126d   :  { %v2737_v3 = vpack.c.bf16 %v2731_v2, %v2730_v0  ;;  %4236 = vrcp.f32 %v4758_v18 }
0x126e   :  { %4238 = vrcp.f32 %v2716_v1  ;;  %v4233_v10 = vpop.eup %4232 }
0x126f   :  { %3896 = vmatmul.mubr.msk.bf16.vlgmr.msra.gmra.mrb[40].mxu1 %vm1004_vm3, %v2737_v3  ;;  %v2733_v23 = vmul.f32 %v4233_v10, %v4764_v40 }
0x1270   :  { %3907 = vmatprep.mubr.msk.bf16.mxu1 %vm4281_vm1, %v4280_v16 }
0x1276   :  { %v4235_v11 = vpop.eup %4234 }
0x1277   :  { %v4237_v12 = vpop.eup %4236  ;;  %v2735_v24 = vmul.f32 %v4235_v11, %v4223_v46 }
0x1278   :  { %v4239_v20 = vpop.eup %4238  ;;  %v2732_v13 = vmul.f32 %v4237_v12, %v4749_v8 }
0x1279   :  { %v2734_v18 = vmul.f32 %v4239_v20, %v4768_v43 }
0x127a   :  { %v2738_v28 = vpack.c.bf16 %v2733_v23, %v2732_v13 }
0x127b   :  { %v2739_v19 = vpack.c.bf16 %v2735_v24, %v2734_v18 }
0x128b   :  { %v4102_v4 = vpop.trf.xlu0 }
0x128c   :  { %v4106_v14 = vunpack.i.h.bf16 %v4102_v4  ;;  %v4103_v15 = vunpack.i.l.bf16 %v4102_v4 }
0x128f   :  { %v4107_v17 = vpop.trf.xlu0 }
0x1290   :  { %v4111_v21 = vunpack.i.h.bf16 %v4107_v17  ;;  %v4108_v22 = vunpack.i.l.bf16 %v4107_v17 }
0x1292   :  { %v2742_v25 = vpack.c.bf16 %v4108_v22, %v4103_v15  ;;  %v2743_v26 = vpack.c.bf16 %v4111_v21, %v4106_v14  ;;  %v4153_v21 = vld [vmem:[%s4910_s14 + $0x18] sm:$0xff]  }
0x1294   :  { %3900 = vmatpush3.bf16.msra.mxu0 %v2742_v25  ;;  %3906 = vmatpush3.bf16.msra.mxu1 %v2743_v26 }
0x1295   :  { %3911 = vmatprep.subr.bf16.mxu0 %v4280_v16  ;;  %3919 = vmatprep.subr.bf16.mxu1 %v4280_v16 }
0x1297   :  { %3902 = vmatmul.mubr.msk.bf16.vlgmr.msra.gmra.mrb[48].mxu0 %vm1004_vm3, %v2738_v28  ;;  %3908 = vmatmul.mubr.msk.bf16.vlgmr.msra.gmra.mrb[44].mxu1 %vm1004_vm3, %v2739_v19  ;;  %v3628_v19 = vld [vmem:[%s4908_s12 + $0x1] ss:$0 sm:$0xff] }
0x1298   :  { %3915 = vmatprep.mubr.msk.bf16.mxu0 %vm4281_vm1, %v4280_v16  ;;  %3923 = vmatprep.mubr.msk.bf16.mxu1 %vm4281_vm1, %v4280_v16 }
0x1299   :  { %3912 = vmatpush3.bf16.msra.mxu0 %v4150_v49 }
0x129a   :  { %3913 = vmatprep.subr.bf16.mxu0 %v4280_v16 }
0x129d   :  { %3914 = vmatpush3.bf16.msra.mxu0 %v4151_v42 }
0x129e   :  { %3927 = vmatprep.subr.bf16.mxu0 %v4280_v16 }
0x133e   :  { %v2781_v8 = vpop.f32.mrb[44].mxu0 }
0x133f   :  { %v3891_v29 = vpop.f32.mrb[45].mxu0 }
0x1340   :  { %v2784_v31 = vpop.f32.mrb[46].mxu0 }
0x1341   :  { %v3892_v35 = vpop.f32.mrb[47].mxu0 }
0x1342   :  { %v2825_v27 = vpop.f32.mrb[40].mxu1  ;;  %v3629_v35 = vld [vmem:[%s4909_s13 + $0x1] ss:$0 sm:$0xff] }
0x1343   :  { %v4112_v30 = vpack.i.bf16 %v2825_v27, %v2781_v8  ;;  %v3897_v37 = vpop.f32.mrb[41].mxu1 }
0x1344   :  { %v2828_v38 = vpop.f32.mrb[42].mxu1 }
0x1345   :  { %v4114_v45 = vpack.i.bf16 %v2828_v38, %v2784_v31  ;;  %v3898_v36 = vpop.f32.mrb[43].mxu1  ;;  %4113 = vxpose.xlu1.b32.start [1/2] (short) (narrow) %v4112_v30, 8 }
0x1346   :  { %v4155_v36 = vld [vmem:[%s4912_s16 + $0x28] sm:$0xff]  }
0x1349   :  { %4115 = vxpose.xlu1.b32.end [2/2] (short) (narrow) %v4114_v45, 8  ;;  %v4154_v45 = vld [vmem:[%s4912_s16 + $0x20] sm:$0xff]  }
0x136a   :  { %v2869_v39 = vpop.f32.mrb[48].mxu0  ;;  %v2913_v40 = vpop.f32.mrb[44].mxu1 }
0x136b   :  { %v4121_v41 = vpack.i.bf16 %v2913_v40, %v2869_v39  ;;  %v3903_v43 = vpop.f32.mrb[49].mxu0  ;;  %v3909_v44 = vpop.f32.mrb[45].mxu1  ;;  %v4156_v39 = vld [vmem:[%s4912_s16 + $0x30] sm:$0xff]   ;;  %v4157_v40 = vld [vmem:[%s4912_s16 + $0x38] sm:$0xff]  }
0x136c   :  { %v2872_v46 = vpop.f32.mrb[50].mxu0  ;;  %v2916_v33 = vpop.f32.mrb[46].mxu1 }
0x136d   :  { %v4123_v34 = vpack.i.bf16 %v2916_v33, %v2872_v46  ;;  %v3910_v47 = vpop.f32.mrb[47].mxu1  ;;  %4122 = vxpose.xlu0.b32.start [1/2] (short) (narrow) %v4121_v41, 8  ;;  %v3904_v48 = vpop.f32.mrb[51].mxu0  ;;  %v3635_v41 = vld [vmem:[%s4911_s15 + $0x1] ss:$0 sm:$0xff] }
0x1371   :  { %4124 = vxpose.xlu0.b32.end [2/2] (short) (narrow) %v4123_v34, 8 }
0x13c5   :  { %v4116_v50 = vpop.trf.xlu1 }
0x13c6   :  { %v4117_v54 = vunpack.i.l.bf16 %v4116_v50  ;;  %v4120_v51 = vunpack.i.h.bf16 %v4116_v50 }
0x13c8   :  { %3048 = vxpose.xlu0.b32.start [1/4] (short) (narrow) %v4117_v54, 16 }
0x13cc   :  { %3049 = vxpose.xlu0.b32.cont [2/4] (short) (narrow) %v4120_v51, 16 }
0x13ed   :  { %v4125_v56 = vpop.trf.xlu0 }
0x13ee   :  { %v4126_v52 = vunpack.i.l.bf16 %v4125_v56  ;;  %v4129_v32 = vunpack.i.h.bf16 %v4125_v56 }
0x13f0   :  { %3050 = vxpose.xlu0.b32.cont [3/4] (short) (narrow) %v4126_v52, 16 }
0x13f4   :  { %3051 = vxpose.xlu0.b32.end [4/4] (short) (narrow) %v4129_v32, 16 }
0x1468   :  { %v3064_v53 = vpop.trf.xlu0 }
0x146c   :  { %v3065_v55 = vpop.trf.xlu0 }
0x146d   :  { %v3080_v58 = vpack.c.bf16 %v3065_v55, %v3064_v53 }
0x146f   :  { %3916 = vmatmul.mubr.msk.bf16.vlgmr.msra.gmra.mrb[52].mxu0 %vm83_vm0, %v3080_v58 }
0x1470   :  { %3935 = vmatprep.mubr.msk.bf16.mxu0 %vm4281_vm1, %v4280_v16  ;;  %3928 = vmatpush3.bf16.msra.mxu0 %v4154_v45 }
0x1471   :  { %3929 = vmatprep.subr.bf16.mxu0 %v4280_v16 }
0x1474   :  { %3930 = vmatpush3.bf16.msra.mxu0 %v4155_v36 }
0x1475   :  { %3931 = vmatprep.subr.bf16.mxu0 %v4280_v16 }
0x1478   :  { %3932 = vmatpush3.bf16.msra.mxu0 %v4156_v39 }
0x1479   :  { %3933 = vmatprep.subr.bf16.mxu0 %v4280_v16 }
0x147c   :  { %3934 = vmatpush3.bf16.msra.mxu0 %v4157_v40 }
0x1542   :  { %v3143_v60 = vpop.f32.mrb[52].mxu0 }
0x1543   :  { %v3144_v61 = vadd.f32 %v3622_v59, %v3143_v60  ;;  %v3917_v63 = vpop.f32.mrb[53].mxu0 }
0x1544   :  { %v3146_v57 = vpop.f32.mrb[54].mxu0 }
0x1545   :  { %v3147_v62 = vadd.f32 %v3622_v59, %v3146_v57  ;;  %v3918_v0 = vpop.f32.mrb[55].mxu0  ;;  %v3150_v2 = vadd.f32 %v3144_v61, %v4667_v6 }
0x1547   :  { %v3151_v3 = vadd.f32 %v3147_v62, %v4669_v7  ;;  %v3156_v5 = vsel %vm83_vm0, %v3150_v2, 0.0  ;;  %v4152_v7 = vld [vmem:[%s4910_s14 + $0x10] sm:$0xff]   ;;  %s4282_s14 = smov [#allocation2]  }
0x1548   :  { %3157 = vadd.xlane.f32.xlu1 %v3156_v5  ;;  %3920 = vmatpush3.bf16.msra.mxu1 %v4152_v7  ;;  %s3534_s5 = sshll.u32 %s4282_s14, 4  ;;  %s3535_s5 = int_to_ptr.vmem [resolvable:$true] %s3534_s5 }
0x1549   :  { %v3159_v1 = vsel %vm83_vm0, %v3151_v3, 0.0  ;;  %3921 = vmatprep.subr.bf16.mxu1 %v4280_v16  ;;  %s4256_s28 = scalar_lea.vmem %s3535_s5, 32  ;;  %p4261_p1 = scmp.lt.s32.totalorder %s3535_s5, %s3535_s5 }
0x154a   :  { %3160 = vadd.xlane.f32.xlu0 %v3159_v1  ;;  %p4257_p0 = scmp.ne.s32.totalorder %s3535_s5, %s4256_s28  ;;  %p4262_p2 = scmp.lt.s32.totalorder %s4256_s28, %s4256_s28 }
0x154c   :  { %3922 = vmatpush3.bf16.msra.mxu1 %v4153_v21  ;;  %p4263_p3 = por %p4262_p2, %p4261_p1 }
0x154d   :  { %3939 = vmatprep.subr.bf16.mxu1 %v4280_v16 }
0x154e   :  { %p4264_p4 = pnand %p4263_p3, %p4257_p0 }
0x15d5   :  { %v3158_v9 = vpop.xlane.xlu1 %3157 }
0x15d6   :  { %v3162_v4 = vmul.f32 0.03125, %v3158_v9 }
0x15d7   :  { %v3161_v10 = vpop.xlane.xlu0 %3160 }
0x15d8   :  { %v3164_v11 = vsub.f32 %v3150_v2, %v3162_v4  ;;  %v3163_v12 = vmul.f32 0.03125, %v3161_v10  ;;  %v3648_v2 = vld [vmem:[%s4913_s17 + $0x1] ss:$0 sm:$0xff] }
0x15da   :  { %v3165_v14 = vsub.f32 %v3151_v3, %v3163_v12  ;;  %v3166_v15 = vmul.f32 %v3164_v11, %v3164_v11 }
0x15dc   :  { %v3168_v17 = vsel %vm83_vm0, %v3166_v15, 0.0  ;;  %v3167_v20 = vmul.f32 %v3165_v14, %v3165_v14 }
0x15dd   :  { %3169 = vadd.xlane.f32.xlu1 %v3168_v17 }
0x15de   :  { %v3171_v6 = vsel %vm83_vm0, %v3167_v20, 0.0 }
0x15e1   :  { %3172 = vadd.xlane.f32.xlu1 %v3171_v6 }
0x166a   :  { %v3170_v22 = vpop.xlane.xlu1 %3169 }
0x166b   :  { %v3174_v23 = vmul.f32 0.03125, %v3170_v22 }
0x166d   :  { %v3176_v24 = vadd.f32 1e-12, %v3174_v23 }
0x166e   :  { %v3173_v25 = vpop.xlane.xlu1 %3172 }
0x166f   :  { %4240 = vrsqrt.f32 %v3176_v24  ;;  %v3175_v26 = vmul.f32 0.03125, %v3173_v25 }
0x1671   :  { %v3177_v13 = vadd.f32 1e-12, %v3175_v26 }
0x1673   :  { %4242 = vrsqrt.f32 %v3177_v13  ;;  %v4158_v13 = vld [vmem:[%s4916_s20] sm:$0xff]  }
0x1679   :  { %v4241_v18 = vpop.eup %4240 }
0x167a   :  { %v3180_v28 = vmul.f32 %v4241_v18, %v3164_v11  ;;  %v4159_v18 = vld [vmem:[%s4916_s20 + $0x8] sm:$0xff]  }
0x167c   :  { %v3188_v29 = vmul.f32 %v3628_v19, %v3180_v28 }
0x167d   :  { %v4243_v8 = vpop.eup %4242 }
0x167e   :  { %v3181_v31 = vmul.f32 %v4243_v8, %v3165_v14  ;;  %v3196_v30 = vadd.f32 %v3629_v35, %v3188_v29 }
0x1680   :  { %v3189_v27 = vmul.f32 %v3628_v19, %v3181_v31 }
0x1682   :  { %v3197_v37 = vadd.f32 %v3629_v35, %v3189_v27 }
0x1684   :  { %v3198_v38 = vpack.c.bf16 %v3197_v37, %v3196_v30 }
0x1686   :  { %3924 = vmatmul.mubr.msk.bf16.vlgmr.msra.gmra.mrb[48].mxu1 %vm83_vm0, %v3198_v38  ;;  %v3657_v38 = vld [vmem:[%s4915_s19 + $0x1] ss:$0 sm:$0xff] }
0x1687   :  { %3943 = vmatprep.mubr.msk.bf16.mxu1 %vm4281_vm1, %v4280_v16  ;;  %3940 = vmatpush3.bf16.msra.mxu1 %v4158_v13 }
0x1688   :  { %3941 = vmatprep.subr.bf16.mxu1 %v4280_v16 }
0x168b   :  { %3942 = vmatpush3.bf16.msra.mxu1 %v4159_v18 }
0x1759   :  { %v3261_v43 = vpop.f32.mrb[48].mxu1 }
0x175a   :  { %v3262_v44 = vadd.f32 %v3635_v41, %v3261_v43  ;;  %v3925_v46 = vpop.f32.mrb[49].mxu1 }
0x175b   :  { %v3264_v33 = vpop.f32.mrb[50].mxu1 }
0x175c   :  { %v3268_v34 = vmul.f32 %v3262_v44, %v3262_v44  ;;  %v3265_v47 = vadd.f32 %v3635_v41, %v3264_v33  ;;  %v3926_v48 = vpop.f32.mrb[51].mxu1 }
0x175e   :  { %v3270_v49 = vmul.f32 %v3268_v34, %v3262_v44  ;;  %v3269_v50 = vmul.f32 %v3265_v47, %v3265_v47 }
0x1760   :  { %v3272_v54 = vmul.f32 0.044715, %v3270_v49  ;;  %v3271_v51 = vmul.f32 %v3269_v50, %v3265_v47  ;;  %v3658_v49 = vld [vmem:[%s4917_s21] ss:$0 sm:$0xff] }
0x1762   :  { %v3274_v42 = vadd.f32 %v3272_v54, %v3262_v44  ;;  %v3273_v56 = vmul.f32 0.044715, %v3271_v51 }
0x1764   :  { %v3276_v52 = vmul.f32 0.7978846, %v3274_v42  ;;  %v3275_v32 = vadd.f32 %v3273_v56, %v3265_v47 }
0x1766   :  { %4244 = vtanh.f32 %v3276_v52  ;;  %v3277_v53 = vmul.f32 0.7978846, %v3275_v32 }
0x1768   :  { %4246 = vtanh.f32 %v3277_v53 }
0x1770   :  { %v4245_v55 = vpop.eup %4244 }
0x1771   :  { %v3280_v58 = vadd.f32 1.0, %v4245_v55 }
0x1772   :  { %v4247_v59 = vpop.eup %4246 }
0x1773   :  { %v3282_v60 = vmul.f32 0.5, %v3280_v58  ;;  %v3281_v61 = vadd.f32 1.0, %v4247_v59 }
0x1775   :  { %v3283_v63 = vmul.f32 0.5, %v3281_v61  ;;  %v3284_v57 = vmul.f32 %v3282_v60, %v3262_v44 }
0x1777   :  { %v3285_v62 = vmul.f32 %v3283_v63, %v3265_v47 }
0x1779   :  { %v3286_v0 = vpack.c.bf16 %v3285_v62, %v3284_v57  ;;  %v3662_v62 = vld [vmem:[%s4918_s22] ss:$0 sm:$0xff] }
0x177b   :  { %3936 = vmatmul.mubr.msk.bf16.vlgmr.msra.gmra.mrb[56].mxu0 %vm1677_vm4, %v3286_v0 }
0x184e   :  { %v3365_v3 = vpop.f32.mrb[56].mxu0 }
0x184f   :  { %v3937_v5 = vpop.f32.mrb[57].mxu0  ;;  %v3366_v9 = vadd.f32 %v3648_v2, %v3365_v3 }
0x1850   :  { %v3368_v1 = vpop.f32.mrb[58].mxu0 }
0x1851   :  { %v3369_v4 = vadd.f32 %v3648_v2, %v3368_v1  ;;  %v3938_v10 = vpop.f32.mrb[59].mxu0  ;;  %v3372_v12 = vadd.f32 %v3366_v9, %v3196_v30  ;;  %v3656_v30 = vld [vmem:[%s4914_s18 + $0x1] ss:$0 sm:$0xff]  ;;  %v3663_v2 = vld [vmem:[%s4919_s23] ss:$0 sm:$0xff] }
0x1853   :  { %v3373_v11 = vadd.f32 %v3369_v4, %v3197_v37  ;;  %v3378_v15 = vsel %vm83_vm0, %v3372_v12, 0.0 }
0x1855   :  { %v3381_v14 = vsel %vm83_vm0, %v3373_v11, 0.0 }
0x1856   :  { %3382 = vadd.xlane.f32.xlu1 %v3381_v14 }
0x185a   :  { %3379 = vadd.xlane.f32.xlu1 %v3378_v15 }
0x18e3   :  { %v3383_v17 = vpop.xlane.xlu1 %3382 }
0x18e4   :  { %v3385_v20 = vmul.f32 0.03125, %v3383_v17 }
0x18e6   :  { %v3387_v6 = vsub.f32 %v3373_v11, %v3385_v20 }
0x18e7   :  { %v3380_v7 = vpop.xlane.xlu1 %3379 }
0x18e8   :  { %v3384_v21 = vmul.f32 0.03125, %v3380_v7  ;;  %v3389_v22 = vmul.f32 %v3387_v6, %v3387_v6 }
0x18ea   :  { %v3386_v23 = vsub.f32 %v3372_v12, %v3384_v21  ;;  %v3393_v24 = vsel %vm83_vm0, %v3389_v22, 0.0 }
0x18eb   :  { %3394 = vadd.xlane.f32.xlu1 %v3393_v24 }
0x18ec   :  { %v3388_v25 = vmul.f32 %v3386_v23, %v3386_v23 }
0x18ee   :  { %v3390_v26 = vsel %vm83_vm0, %v3388_v25, 0.0 }
0x18ef   :  { %3391 = vadd.xlane.f32.xlu1 %v3390_v26 }
0x1978   :  { %v3395_v28 = vpop.xlane.xlu1 %3394 }
0x1979   :  { %v3397_v19 = vmul.f32 0.03125, %v3395_v28 }
0x197b   :  { %v3399_v8 = vadd.f32 1e-12, %v3397_v19 }
0x197c   :  { %v3392_v29 = vpop.xlane.xlu1 %3391 }
0x197d   :  { %4248 = vrsqrt.f32 %v3399_v8  ;;  %v3396_v31 = vmul.f32 0.03125, %v3392_v29 }
0x197f   :  { %v3398_v35 = vadd.f32 1e-12, %v3396_v31 }
0x1981   :  { %4250 = vrsqrt.f32 %v3398_v35 }
0x1987   :  { %v4249_v27 = vpop.eup %4248 }
0x1988   :  { %v3403_v37 = vmul.f32 %v4249_v27, %v3387_v6 }
0x198a   :  { %v3411_v16 = vmul.f32 %v3656_v30, %v3403_v37 }
0x198b   :  { %v4251_v45 = vpop.eup %4250 }
0x198c   :  { %v3419_v36 = vadd.f32 %v3657_v38, %v3411_v16  ;;  %v3402_v39 = vmul.f32 %v4251_v45, %v3386_v23 }
0x198e   :  { %v3421_v40 = vpack.c.bf16 %v3419_v36, %v3419_v36  ;;  %v3410_v41 = vmul.f32 %v3656_v30, %v3402_v39 }
0x1990   :  { %v3418_v43 = vadd.f32 %v3657_v38, %v3410_v41  ;;  %v3436_v44 = vunpack.c.l.b16 %v3421_v40 }
0x1992   :  { %v3420_v46 = vpack.c.bf16 %v3418_v43, %v3418_v43  ;;  %v3437_v34 = vrot.slane %v3436_v44, 7 }
0x1994   :  { %v3435_v33 = vunpack.c.l.b16 %v3420_v46 }
0x1996   :  { %v3439_v47 = vsel %vm3438_vm5, %v3437_v34, %v3435_v33 }
0x1997   :  { %v3440_v48 = vpack.c.b16 %v3439_v47, %v3439_v47 }
0x1999   :  { %3944 = vmatmul.mubr.msk.bf16.vlgmr.msra.gmra.mrb[52].mxu1 %vm83_vm0, %v3440_v48 }
0x1a6c   :  { %v3490_v50 = vpop.f32.mrb[52].mxu1 }
0x1a6d   :  { %v3491_v54 = vadd.f32 %v3658_v49, %v3490_v50  ;;  %v3945_v51 = vpop.f32.mrb[53].mxu1 }
0x1a6e   :  { %v3493_v42 = vpop.f32.mrb[54].mxu1 }
0x1a6f   :  { %v3946_v56 = vpop.f32.mrb[55].mxu1  ;;  %v3499_v52 = vsel %vm3498_vm6, %v3491_v54, 0.0 }
0x1a70   :  { %3500 = vadd.xlane.f32.xlu0 %v3499_v52 }
0x1afd   :  { %v3501_v32 = vpop.xlane.xlu0 %3500 }
0x1afe   :  { %v3503_v53 = vmul.f32 0.0625, %v3501_v32 }
0x1b00   :  { %v3504_v55 = vsub.f32 %v3491_v54, %v3503_v53 }
0x1b02   :  { %v3505_v58 = vmul.f32 %v3504_v55, %v3504_v55 }
0x1b04   :  { %v3506_v59 = vsel %vm3498_vm6, %v3505_v58, 0.0 }
0x1b05   :  { %3507 = vadd.xlane.f32.xlu1 %v3506_v59 }
0x1b92   :  { %v3508_v60 = vpop.xlane.xlu1 %3507 }
0x1b93   :  { %v3509_v61 = vmul.f32 0.0625, %v3508_v60 }
0x1b95   :  { %v3510_v63 = vadd.f32 1e-05, %v3509_v61 }
0x1b97   :  { %4252 = vrsqrt.f32 %v3510_v63 }
0x1ba1   :  { %v4253_v57 = vpop.eup %4252 }
0x1ba2   :  { %v3512_v0 = vmul.f32 %v4253_v57, %v3504_v55 }
0x1ba4   :  { %v3519_v3 = vmul.f32 %v3662_v62, %v3512_v0 }
0x1ba6   :  { %v3526_v5 = vadd.f32 %v3663_v2, %v3519_v3 }
0x1ba8   :  { %3527 = vst.msk [vmem:[#allocation2] sm:$0x3] %vm3498_vm6, %v3526_v5 }
0x1ba9   :  { %4267 = shalt.err (!%p4264_p4)
}
0x1baa   :  { %s4268_s12 = scalar_lea.hbm %s4920_s24, 32 }
0x1bab   :  { %p4269_p5 = scmp.ne.s32.totalorder %s4920_s24, %s4268_s12  ;;  %p4272_p6 = scmp.lt.u32.totalorder %s4268_s12, %s4920_s24 }
0x1bad   :  { %p4274_p7 = pnand %p4272_p6, %p4269_p5 }
0x1baf   :  { %4277 = shalt.err (!%p4274_p7)
}
0x1bb0   :  { %3537 = dma.vmem_to_hbm [thread:$0]  %s3535_s5, 32, %s4920_s24, [#allocation3]  }
0x1bb1   :  { %4278 = dma.done.wait [#allocation3], 32  }
0x1bb2   :  { %4279 = vsyncadd [#allocation3], 4294967264 }
0x1bb3   :  { %3541 = vsyncpa [#allocation3], 1 }

</bundles_post_ra>
